<compile_context>
chip_gen: v7x
topology: tpu7x:2x2x1
jax: 0.10.0
libtpu: 0.0.40
codegen_flags: <defaults>
</compile_context>

<pallas_src>
import jax
import jax.numpy as jnp
from jax import lax
from jax.experimental import pallas as pl
from jax.experimental.pallas import tpu as pltpu


# ----------------------------- constants (small synthetic config) -----------
BATCH_SIZE = 32
MAX_LENGTH = 16          # L
GLOVE_DIM = 16           # E  (embedding_dim)
POS_EMBEDDING_DIM = 8    # P
VOCAB_SIZE = 50
CNN_WINDOW = 3
FILTER_LIST = (3, 4, 5)
FILTER_NUM = 8           # C
CNN_HIDDEN_DIM = 32      # hidden_dim2 (module overrides ctor arg with constant)
LABEL_SIZE = 19

FEATURE_DIM = POS_EMBEDDING_DIM * 2 + GLOVE_DIM * 3          # F = 64
FILTER_DIM = FILTER_NUM * len(FILTER_LIST)                   # 24
LEX_DIM = GLOVE_DIM * 6                                      # 96
LINE_IN_DIM = LEX_DIM + CNN_HIDDEN_DIM                       # 128

KMAX = max(FILTER_LIST)                                      # 5
WIN_DIM = KMAX * FEATURE_DIM                                 # 320
LANES = 128                                                  # lane-dense width
NEG_BIG = -1.0e30                                            # max-pool sentinel

# packed-weight row offsets (all multiples of 8 -> aligned ref slices)
ROW_WCONV = 0
ROW_BCONV = ROW_WCONV + WIN_DIM                   # 320
ROW_WN    = ROW_BCONV + 8                         # 328
ROW_BN    = ROW_WN + LANES                        # 456
ROW_WLEX  = ROW_BN + 8                            # 464  (w_lex rows 464..591)
ROW_WG    = ROW_WLEX + LANES                      # 592  (w_g  rows 592..719)
ROW_BL    = ROW_WG + LANES                        # 720
ROW_MASK  = ROW_BL + 8                            # 728  (additive pool mask)
MASK_ROWS = ((MAX_LENGTH + 7) // 8) * 8           # 16
W_ROWS    = ROW_MASK + MASK_ROWS                  # 744


# ----------------------------- shared fused math -----------------------------
def _weight_slices(w):
    """Static, sublane-aligned slices of the packed (W_ROWS, 128) weights.
    Works on an in-kernel Ref (loads the sub-block) or on a plain array."""
    return dict(
        w_conv=w[ROW_WCONV:ROW_WCONV + WIN_DIM, :],    # (320, 128) bf16
        b_conv=w[ROW_BCONV:ROW_BCONV + 1, :],          # (1, 128)
        w_n=w[ROW_WN:ROW_WN + LANES, :],               # (128, 128)
        b_n=w[ROW_BN:ROW_BN + 1, :],                   # (1, 128)
        w_out=w[ROW_WLEX:ROW_WLEX + 2 * LANES, :],     # (256, 128)  [w_lex; w_g]
        b_l=w[ROW_BL:ROW_BL + 1, :],                   # (1, 128)
        mask=w[ROW_MASK:ROW_MASK + MAX_LENGTH, :],     # (L, 128) additive, 0/-BIG
    )


def fused_forward_math(win, lex, w):
    """win: (TB, L, 320) bf16, lex: (TB, 128) bf16, w: packed bf16 slices.
    Returns lane-dense logits (TB, 128) f32 (cols >= LABEL_SIZE are zero)."""
    TB, L, _ = win.shape

    # All three convs as one bf16 MXU matmul with f32 accumulation.
    s = jnp.dot(win.reshape(TB * L, WIN_DIM), w["w_conv"],
                preferred_element_type=jnp.float32)              # (TB*L, 128)

    # Additive validity mask (0 valid / -1e30 invalid) on the PRE-activation,
    # then max-pool over L, THEN bias + tanh (hoisted: both are monotone /
    # column-constant, so the result is identical to tanh-before-max).
    s = s.reshape(TB, L, LANES) + w["mask"].astype(jnp.float32)[None]
    sf = jnp.tanh(jnp.max(s, axis=1)
                  + w["b_conv"].astype(jnp.float32))             # (TB, 128) f32

    g = jnp.tanh(jnp.dot(sf.astype(jnp.bfloat16), w["w_n"],
                         preferred_element_type=jnp.float32)
                 + w["b_n"].astype(jnp.float32))                 # (TB, 128) f32

    # Merged output matmul: [lex, g] (TB, 256) against contiguous rows 464..719.
    og = jnp.concatenate([lex, g.astype(jnp.bfloat16)], axis=-1)  # (TB, 256) bf16
    logits = (jnp.dot(og, w["w_out"], preferred_element_type=jnp.float32)
              + w["b_l"].astype(jnp.float32))                    # (TB, 128) f32
    return logits


# ----------------------------- Pallas kernel --------------------------------
def attcnn_kernel(win_ref, lex_ref, w_ref, out_ref):
    w = _weight_slices(w_ref)
    out_ref[...] = fused_forward_math(win_ref[...], lex_ref[...], w)


def pick_tile_b(batch):
    """grid=1 on single-TC chips (v5e/v6e); 2-step parallel grid on dual-TC
    v7x so both TensorCores get work; tile cap respects v7x's smaller VMEM."""
    kind = ""
    try:
        kind = jax.devices()[0].device_kind.lower()
    except Exception:
        pass
    dual_tc = ("v7" in kind) or ("7x" in kind)
    steps = 2 if dual_tc else 1
    cap = 256 if dual_tc else 512
    tb = -(-batch // steps)                 # cdiv
    tb = min(tb, cap)
    tb = max(8, ((tb + 7) // 8) * 8)        # multiple of 8 sublanes
    return tb


def attcnn_pallas(window, lex_pad, w_packed, tile_b):
    """window: (Bp, L, 320) bf16, lex_pad: (Bp, 128) bf16, w_packed: (744,128) bf16.
    Returns lane-dense logits (Bp, 128) f32."""
    Bp = window.shape[0]
    assert Bp % tile_b == 0
    grid = (Bp // tile_b,)
    return pl.pallas_call(
        attcnn_kernel,
        out_shape=jax.ShapeDtypeStruct((Bp, LANES), jnp.float32),
        grid_spec=pltpu.PrefetchScalarGridSpec(
            num_scalar_prefetch=0,
            grid=grid,
            in_specs=[
                pl.BlockSpec((tile_b, MAX_LENGTH, WIN_DIM), lambda b: (b, 0, 0)),
                pl.BlockSpec((tile_b, LANES), lambda b: (b, 0)),
                # constant index_map -> weights DMA'd once, VMEM-resident
                pl.BlockSpec((W_ROWS, LANES), lambda b: (0, 0)),
            ],
            out_specs=pl.BlockSpec((tile_b, LANES), lambda b: (b, 0)),
        ),
        compiler_params=pltpu.CompilerParams(
            dimension_semantics=("parallel",)),
    )(window, lex_pad, w_packed)


# ----------------------------- JAX glue (embedding / WF / lexical) ----------
def build_features(params, inputs, e1s, e1e, e2s, e2e, p1, p2):
    """Replicates the PyTorch forward up to (and including) `embed` and the
    getLextual features; returns (embed (B,L,F), lex (B,6E))."""
    B, L = inputs.shape

    # inputs = cat([zeros, inputs, zeros], 1) ; embedding lookup (pad token = 0)
    zeros_col = jnp.zeros((B, 1), dtype=inputs.dtype)
    padded = jnp.concatenate([zeros_col, inputs, zeros_col], axis=1)   # (B, L+2)
    word_embed = params["embedding"][padded]                           # (B, L+2, E)

    # --- getLextual on word_embed[:, 1:] --------------------------------------
    # NOTE: e1s-1 / e1e+1 etc. can go out of bounds for boundary entities; JAX
    # clamps OOB gathers while PyTorch would error.  Demo inputs stay in range.
    we1 = word_embed[:, 1:]                                            # (B, L+1, E)
    pos = jnp.arange(L + 1)

    def span_mean(s, e):
        mask = (pos[None, :] >= s[:, None]) & (pos[None, :] <= e[:, None])
        msum = jnp.sum(we1 * mask[..., None].astype(we1.dtype), axis=1)
        cnt = jnp.sum(mask, axis=1, keepdims=True).astype(we1.dtype)
        return msum / cnt                                              # (B, E)

    l1 = span_mean(e1s, e1e)
    l2 = span_mean(e2s, e2e)
    bidx = jnp.arange(B)
    l3 = jnp.concatenate([we1[bidx, e1s - 1], we1[bidx, e1e + 1]], axis=-1)
    l4 = jnp.concatenate([we1[bidx, e2s - 1], we1[bidx, e2e + 1]], axis=-1)
    lex = jnp.concatenate([l1, l2, l3, l4], axis=-1)                   # (B, 6E)

    # --- WF: windowed concat of word embeddings (row 0 left as zeros) ---------
    stack = jnp.concatenate(
        [word_embed[:, j:j + L, :] for j in range(CNN_WINDOW)], axis=-1)
    WF = stack.at[:, 0, :].set(0.0)

    pos1_embed = params["pos1_embedding"][p1]                          # (B, L, P)
    pos2_embed = params["pos2_embedding"][p2]                          # (B, L, P)
    embed = jnp.concatenate([WF, pos1_embed, pos2_embed], axis=-1)     # (B, L, F)
    return embed.astype(jnp.float32), lex.astype(jnp.float32)


def build_window(embed):
    """(B, L, F) -> (B, L, KMAX*F) conv window tensor (zero-padded at the end)."""
    B, L, F = embed.shape
    padded = jnp.pad(embed, ((0, 0), (0, KMAX - 1), (0, 0)))
    return jnp.concatenate([padded[:, d:d + L, :] for d in range(KMAX)], axis=-1)


def build_pool_mask():
    """Additive (L, 128) max-pool mask: 0 where the conv window is valid for
    that filter's column group, -1e30 elsewhere (applied pre-activation)."""
    pos = jnp.arange(MAX_LENGTH)[:, None]
    col = jnp.arange(LANES)[None, :]
    valid = jnp.zeros((MAX_LENGTH, LANES), jnp.bool_)
    for i, k in enumerate(FILTER_LIST):
        grp = ((col >= i * FILTER_NUM) & (col < (i + 1) * FILTER_NUM)
               & (pos <= MAX_LENGTH - k))
        valid = valid | grp
    return jnp.where(valid, 0.0, NEG_BIG).astype(jnp.float32)


def pack_weights(params):
    """Pack every weight/bias (+ the additive pool mask) into one
    (W_ROWS, 128) bf16 array, lane-padded with zeros."""
    def pad_to(x, rows, cols=LANES):
        return jnp.pad(x, ((0, rows - x.shape[0]), (0, cols - x.shape[1])))

    # fused conv weight (320, 24) + bias (1, 24); column group i = filter i
    wblocks, bblocks = [], []
    for k, (w, b) in zip(FILTER_LIST, params["convs"]):
        blk = jnp.zeros((WIN_DIM, FILTER_NUM), jnp.float32)
        blk = blk.at[:k * FEATURE_DIM].set(w.reshape(k * FEATURE_DIM, FILTER_NUM))
        wblocks.append(blk)
        bblocks.append(b)
    w_conv = jnp.concatenate(wblocks, axis=1)
    b_conv = jnp.concatenate(bblocks, axis=1)

    wl_lex = params["wl"][:LEX_DIM]               # (96, 19)
    wl_g = params["wl"][LEX_DIM:]                 # (32, 19)

    packed = jnp.concatenate([
        pad_to(w_conv, WIN_DIM),                  # rows   0..319
        pad_to(b_conv, 8),                        # rows 320..327
        pad_to(params["wn"], LANES),              # rows 328..455
        pad_to(params["bn"], 8),                  # rows 456..463
        pad_to(wl_lex, LANES),                    # rows 464..591
        pad_to(wl_g, LANES),                      # rows 592..719
        pad_to(params["bl"], 8),                  # rows 720..727
        pad_to(build_pool_mask(), MASK_ROWS),     # rows 728..743
    ], axis=0)
    assert packed.shape == (W_ROWS, LANES)
    return packed.astype(jnp.bfloat16)


def prepare_kernel_inputs(embed, lex, tile_b):
    """Wrapper-side layout work: window tensor, lane-padded lex, batch padding
    to a multiple of tile_b, bf16 casts (halves DMA bytes; MXU-native)."""
    window = build_window(embed)
    B = window.shape[0]
    Bp = ((B + tile_b - 1) // tile_b) * tile_b
    window = jnp.pad(window, ((0, Bp - B), (0, 0), (0, 0))).astype(jnp.bfloat16)
    lex_pad = jnp.pad(lex, ((0, Bp - B), (0, LANES - LEX_DIM))).astype(jnp.bfloat16)
    return window, lex_pad


# ----------------------------- pure-JAX references ---------------------------
def reference_unfused(embed, lex, params):
    """Original-structure f32 forward (conv-per-filter, concat) — ground truth."""
    pooled = []
    for (w, b), k in zip(params["convs"], FILTER_LIST):
        Lk = MAX_LENGTH - k + 1
        acc = jnp.zeros((embed.shape[0], Lk, FILTER_NUM), jnp.float32)
        for dk in range(k):
            acc = acc + jnp.einsum("blf,fc->blc", embed[:, dk:dk + Lk, :], w[dk])
        z = jnp.tanh(acc + b[0])
        pooled.append(jnp.max(z, axis=1))
    sf = jnp.concatenate(pooled, axis=-1)
    g = jnp.tanh(sf @ params["wn"] + params["bn"])
    o = jnp.concatenate([lex, g], axis=-1)
    return o @ params["wl"] + params["bl"]


# ----------------------------- parameter init --------------------------------
def init_params(key):
    keys = jax.random.split(key, 16)
    p = {}
    p["embedding"] = 0.1 * jax.random.normal(keys[0], (VOCAB_SIZE, GLOVE_DIM), jnp.float32)
    p["pos1_embedding"] = 0.1 * jax.random.normal(
        keys[1], (MAX_LENGTH * 2 + 3, POS_EMBEDDING_DIM), jnp.float32)
    p["pos2_embedding"] = 0.1 * jax.random.normal(
        keys[2], (MAX_LENGTH * 2 + 3, POS_EMBEDDING_DIM), jnp.float32)

    conv_params = []
    for i, k in enumerate(FILTER_LIST):
        w = 0.1 * jax.random.normal(keys[3 + i], (k, FEATURE_DIM, FILTER_NUM), jnp.float32)
        b = 0.05 * jax.random.normal(keys[6 + i], (1, FILTER_NUM), jnp.float32)
        conv_params.append((w, b))
    p["convs"] = conv_params

    p["wn"] = 0.1 * jax.random.normal(keys[9], (FILTER_DIM, CNN_HIDDEN_DIM), jnp.float32)
    p["bn"] = 0.05 * jax.random.normal(keys[10], (1, CNN_HIDDEN_DIM), jnp.float32)
    p["wl"] = 0.1 * jax.random.normal(keys[11], (LINE_IN_DIM, LABEL_SIZE), jnp.float32)
    p["bl"] = 0.05 * jax.random.normal(keys[12], (1, LABEL_SIZE), jnp.float32)
    return p


# ----------------------------- main -------------------------------------------
if __name__ == "__main__":
    key = jax.random.PRNGKey(0)
    kk = jax.random.split(key, 8)

    params = init_params(kk[0])

    inputs = jax.random.randint(kk[1], (BATCH_SIZE, MAX_LENGTH), 1, VOCAB_SIZE, jnp.int32)
    p1 = jax.random.randint(kk[2], (BATCH_SIZE, MAX_LENGTH), 0, MAX_LENGTH * 2 + 3, jnp.int32)
    p2 = jax.random.randint(kk[3], (BATCH_SIZE, MAX_LENGTH), 0, MAX_LENGTH * 2 + 3, jnp.int32)
    # entity spans kept strictly inside the sentence (see OOB note in glue)
    e1s = jax.random.randint(kk[4], (BATCH_SIZE,), 1, 4, jnp.int32)
    e1e = e1s + jax.random.randint(kk[5], (BATCH_SIZE,), 0, 3, jnp.int32)
    e2s = e1e + 2 + jax.random.randint(kk[6], (BATCH_SIZE,), 0, 3, jnp.int32)
    e2e = e2s + jax.random.randint(kk[7], (BATCH_SIZE,), 0, 3, jnp.int32)

    embed, lex = build_features(params, inputs, e1s, e1e, e2s, e2e, p1, p2)
    tile_b = pick_tile_b(BATCH_SIZE)
    window, lex_pad = prepare_kernel_inputs(embed, lex, tile_b)
    w_packed = pack_weights(params)

    y_pad = attcnn_pallas(window, lex_pad, w_packed, tile_b)
    y_pad = jax.block_until_ready(y_pad)
    y = y_pad[:BATCH_SIZE, :LABEL_SIZE]
    assert y.shape == (BATCH_SIZE, LABEL_SIZE)

    # Tight check: identical fused bf16 math in plain JAX (validates the kernel).
    y_ref_fused = fused_forward_math(window, lex_pad, _weight_slices(w_packed))
    y_ref_fused = y_ref_fused[:BATCH_SIZE, :LABEL_SIZE]
    assert jnp.allclose(y, y_ref_fused, atol=1e-3, rtol=1e-3)

    # Structural check: original unfused f32 forward (tolerance = bf16 operand noise).
    y_ref = reference_unfused(embed, lex, params)
    assert jnp.allclose(y, y_ref, atol=2e-2, rtol=2e-2)

    print("KERNEL_OK")
</pallas_src>

<mosaic_0001>
module attributes {stable_mosaic.version = 11 : i64} {
  func.func @attcnn_kernel(%arg0: i32, %arg1: memref<32x16x320xbf16, #tpu.memory_space<vmem>>, %arg2: memref<32x128xbf16, #tpu.memory_space<vmem>>, %arg3: memref<744x128xbf16, #tpu.memory_space<vmem>>, %arg4: memref<32x128xf32, #tpu.memory_space<vmem>>) attributes {dimension_semantics = [#tpu.dimension_semantics<parallel>], iteration_bounds = array<i64: 1>, scalar_prefetch = 0 : i64, scratch_operands = 0 : i64, tpu.core_type = #tpu.core_type<tc>, window_params = [{transform_indices = @transform_0, window_bounds = array<i64: 32, 16, 320>}, {transform_indices = @transform_1, window_bounds = array<i64: 32, 128>}, {pipeline_mode = #tpu.pipeline_mode<synchronous>, transform_indices = @transform_2, window_bounds = array<i64: 744, 128>}, {transform_indices = @transform_3, window_bounds = array<i64: 32, 128>}]} {
    %c0 = arith.constant 0 : index
    %c0_0 = arith.constant 0 : index
    %0 = vector.load %arg3[%c0, %c0_0] : memref<744x128xbf16, #tpu.memory_space<vmem>>, vector<320x128xbf16>
    %c320 = arith.constant 320 : index
    %c0_1 = arith.constant 0 : index
    %1 = vector.load %arg3[%c320, %c0_1] : memref<744x128xbf16, #tpu.memory_space<vmem>>, vector<1x128xbf16>
    %c328 = arith.constant 328 : index
    %c0_2 = arith.constant 0 : index
    %2 = vector.load %arg3[%c328, %c0_2] : memref<744x128xbf16, #tpu.memory_space<vmem>>, vector<128x128xbf16>
    %c456 = arith.constant 456 : index
    %c0_3 = arith.constant 0 : index
    %3 = vector.load %arg3[%c456, %c0_3] : memref<744x128xbf16, #tpu.memory_space<vmem>>, vector<1x128xbf16>
    %c464 = arith.constant 464 : index
    %c0_4 = arith.constant 0 : index
    %4 = vector.load %arg3[%c464, %c0_4] : memref<744x128xbf16, #tpu.memory_space<vmem>>, vector<256x128xbf16>
    %c720 = arith.constant 720 : index
    %c0_5 = arith.constant 0 : index
    %5 = vector.load %arg3[%c720, %c0_5] : memref<744x128xbf16, #tpu.memory_space<vmem>>, vector<1x128xbf16>
    %c728 = arith.constant 728 : index
    %c0_6 = arith.constant 0 : index
    %6 = vector.load %arg3[%c728, %c0_6] : memref<744x128xbf16, #tpu.memory_space<vmem>>, vector<16x128xbf16>
    %c0_7 = arith.constant 0 : index
    %c0_8 = arith.constant 0 : index
    %c0_9 = arith.constant 0 : index
    %7 = vector.load %arg1[%c0_7, %c0_8, %c0_9] : memref<32x16x320xbf16, #tpu.memory_space<vmem>>, vector<32x16x320xbf16>
    %c0_10 = arith.constant 0 : index
    %c0_11 = arith.constant 0 : index
    %8 = vector.load %arg2[%c0_10, %c0_11] : memref<32x128xbf16, #tpu.memory_space<vmem>>, vector<32x128xbf16>
    %9 = vector.shape_cast %7 : vector<32x16x320xbf16> to vector<512x320xbf16>
    %cst = arith.constant dense<0.000000e+00> : vector<512x128xf32>
    %10 = tpu.matmul %9, %0, %cst {dimension_numbers = #tpu.dot_dimension_numbers<[1], [0], [0], [1], [0, 0, 1, 1], [], []>} : vector<512x320xbf16>, vector<320x128xbf16>, vector<512x128xf32> -> vector<512x128xf32>
    %11 = vector.shape_cast %10 : vector<512x128xf32> to vector<32x16x128xf32>
    %12 = arith.extf %6 : vector<16x128xbf16> to vector<16x128xf32>
    %13 = vector.shape_cast %12 : vector<16x128xf32> to vector<1x16x128xf32>
    %14 = vector.broadcast %13 : vector<1x16x128xf32> to vector<32x16x128xf32>
    %15 = arith.addf %11, %14 : vector<32x16x128xf32>
    %cst_12 = arith.constant dense<0xFF800000> : vector<32x128xf32>
    %16 = vector.multi_reduction <maximumf>, %15, %cst_12 [1] : vector<32x16x128xf32> to vector<32x128xf32>
    %17 = arith.extf %1 : vector<1x128xbf16> to vector<1x128xf32>
    %18 = vector.broadcast %17 : vector<1x128xf32> to vector<32x128xf32>
    %19 = arith.addf %16, %18 : vector<32x128xf32>
    %20 = math.tanh %19 : vector<32x128xf32>
    %21 = arith.truncf %20 : vector<32x128xf32> to vector<32x128xbf16>
    %cst_13 = arith.constant dense<0.000000e+00> : vector<32x128xf32>
    %22 = tpu.matmul %21, %2, %cst_13 {dimension_numbers = #tpu.dot_dimension_numbers<[1], [0], [0], [1], [0, 0, 1, 1], [], []>} : vector<32x128xbf16>, vector<128x128xbf16>, vector<32x128xf32> -> vector<32x128xf32>
    %23 = arith.extf %3 : vector<1x128xbf16> to vector<1x128xf32>
    %24 = vector.broadcast %23 : vector<1x128xf32> to vector<32x128xf32>
    %25 = arith.addf %22, %24 : vector<32x128xf32>
    %26 = math.tanh %25 : vector<32x128xf32>
    %27 = arith.truncf %26 : vector<32x128xf32> to vector<32x128xbf16>
    %28 = tpu.concatenate %8, %27 in 1 : vector<32x128xbf16>, vector<32x128xbf16> -> vector<32x256xbf16>
    %cst_14 = arith.constant dense<0.000000e+00> : vector<32x128xf32>
    %29 = tpu.matmul %28, %4, %cst_14 {dimension_numbers = #tpu.dot_dimension_numbers<[1], [0], [0], [1], [0, 0, 1, 1], [], []>} : vector<32x256xbf16>, vector<256x128xbf16>, vector<32x128xf32> -> vector<32x128xf32>
    %30 = arith.extf %5 : vector<1x128xbf16> to vector<1x128xf32>
    %31 = vector.broadcast %30 : vector<1x128xf32> to vector<32x128xf32>
    %32 = arith.addf %29, %31 : vector<32x128xf32>
    %c0_15 = arith.constant 0 : index
    %c0_16 = arith.constant 0 : index
    %33 = vector.load %arg4[%c0_15, %c0_16] : memref<32x128xf32, #tpu.memory_space<vmem>>, vector<32x128xf32>
    tpu.vector_store %arg4[%c0_15, %c0_16], %32 {strides = array<i32>} : memref<32x128xf32, #tpu.memory_space<vmem>>, vector<32x128xf32>,
    return
  }
  func.func @transform_0(%arg0: i32) -> (i32, i32, i32) {
    %c0_i32 = arith.constant 0 : i32
    %c0_i32_0 = arith.constant 0 : i32
    %c0_i32_1 = arith.constant 0 : i32
    return %arg0, %c0_i32, %c0_i32_0 : i32, i32, i32
  }
  func.func @transform_1(%arg0: i32) -> (i32, i32) {
    %c0_i32 = arith.constant 0 : i32
    %c0_i32_0 = arith.constant 0 : i32
    return %arg0, %c0_i32 : i32, i32
  }
  func.func @transform_2(%arg0: i32) -> (i32, i32) {
    %c0_i32 = arith.constant 0 : i32
    %c0_i32_0 = arith.constant 0 : i32
    %c0_i32_1 = arith.constant 0 : i32
    return %c0_i32, %c0_i32_0 : i32, i32
  }
  func.func @transform_3(%arg0: i32) -> (i32, i32) {
    %c0_i32 = arith.constant 0 : i32
    %c0_i32_0 = arith.constant 0 : i32
    return %arg0, %c0_i32 : i32, i32
  }
}

</mosaic_0001>

<bundles_post_ra>
// kernel: tpu_custom_call.1
= control target key start
LH: loop header
LB: loop body
LE: loop exit
PB: predicated region body
PF: predicated region fallthrough
CT: control target
= control target key end

     0   :  { %8 = vsyncpa [#allocation3], 0  ;;  %s3530_s0 = inlined_call_operand.hbm [shape: bf16[32,16,320], index: 0, kind: input, shape index: {}]   ;;  %s3531_s1 = inlined_call_operand.hbm [shape: bf16[32,128], index: 1, kind: input, shape index: {}]   ;;  %s3532_s2 = inlined_call_operand.hbm [shape: bf16[744,128], index: 2, kind: input, shape index: {}]   ;;  %s3533_s3 = inlined_call_operand.hbm [shape: f32[32,128], index: 3, kind: output, shape index: {}]  }
   0x1   :  { %9 = vsyncpa [#allocation6], 0 }
   0x2   :  { %10 = vsyncpa [#allocation4], 0  ;;  %s3094_s12 = smov [#allocation5]   ;;  %s3000_s16 = scalar_lea.hbm %s3531_s1, 256 }
   0x3   :  { %s28_s13 = sshll.u32 %s3094_s12, 4  ;;  %p3001_p0 = scmp.ne.s32.totalorder %s3531_s1, %s3000_s16  ;;  %s29_s13 = int_to_ptr.vmem [resolvable:$true] %s28_s13 }
   0x4   :  { %p3004_p1 = scmp.lt.u32.totalorder %s3000_s16, %s3531_s1 }
   0x6   :  { %p3006_p2 = pnand %p3004_p1, %p3001_p0 }
   0x8   :  { %3009 = shalt.err (!%p3006_p2)
}
   0x9   :  { %s3010_s21 = scalar_lea.vmem %s29_s13, 256  ;;  %p3015_p4 = scmp.lt.s32.totalorder %s29_s13, %s29_s13 }
   0xa   :  { %p3011_p3 = scmp.ne.s32.totalorder %s29_s13, %s3010_s21  ;;  %p3016_p5 = scmp.lt.s32.totalorder %s3010_s21, %s3010_s21 }
   0xc   :  { %p3017_p6 = por %p3016_p5, %p3015_p4 }
   0xe   :  { %p3018_p7 = pnand %p3017_p6, %p3011_p3 }
  0x10   :  { %3021 = shalt.err (!%p3018_p7)
}
  0x11   :  { %s3095_s22 = smov 64   ;;  %s3096_s23 = smov 4  }
  0x12   :  { %34 = dma.hbm_to_vmem [thread:$0]  %s3531_s1, 256, %s29_s13, [#allocation6], %s3095_s22, %s3095_s22, %s3096_s23  }
  0x13   :  { %s3097_s26 = smov [#allocation2]   ;;  %s3022_s30 = scalar_lea.hbm %s3530_s0, 12288 }
  0x14   :  { %s16_s27 = sshll.u32 %s3097_s26, 4  ;;  %p3023_p8 = scmp.ne.s32.totalorder %s3530_s0, %s3022_s30  ;;  %s17_s27 = int_to_ptr.vmem [resolvable:$true] %s16_s27 }
  0x15   :  { %p3026_p9 = scmp.lt.u32.totalorder %s3022_s30, %s3530_s0 }
  0x17   :  { %p3028_p10 = pnand %p3026_p9, %p3023_p8 }
  0x19   :  { %3031 = shalt.err (!%p3028_p10)
}
  0x1a   :  { %s3032_s8 = scalar_lea.vmem %s17_s27, 12288  ;;  %p3037_p12 = scmp.lt.s32.totalorder %s17_s27, %s17_s27 }
  0x1b   :  { %p3033_p11 = scmp.ne.s32.totalorder %s17_s27, %s3032_s8  ;;  %p3038_p13 = scmp.lt.s32.totalorder %s3032_s8, %s3032_s8 }
  0x1d   :  { %p3039_p0 = por %p3038_p13, %p3037_p12 }
  0x1f   :  { %p3040_p1 = pnand %p3039_p0, %p3033_p11 }
  0x21   :  { %3043 = shalt.err (!%p3040_p1)
}
  0x22   :  { %s3098_s1 = smov 192   ;;  %s3099_s9 = smov 12  }
  0x23   :  { %22 = dma.hbm_to_vmem [thread:$0]  %s3530_s0, 12288, %s17_s27, [#allocation3], %s3098_s1, %s3098_s1, %s3099_s9  }
  0x24   :  { %s3100_s12 = smov [#allocation7]   ;;  %s3044_s16 = scalar_lea.hbm %s3532_s2, 5952 }
  0x25   :  { %s40_s13 = sshll.u32 %s3100_s12, 4  ;;  %p3045_p2 = scmp.ne.s32.totalorder %s3532_s2, %s3044_s16  ;;  %s41_s13 = int_to_ptr.vmem [resolvable:$true] %s40_s13 }
  0x26   :  { %p3048_p3 = scmp.lt.u32.totalorder %s3044_s16, %s3532_s2 }
  0x28   :  { %p3050_p4 = pnand %p3048_p3, %p3045_p2 }
  0x2a   :  { %3053 = shalt.err (!%p3050_p4)
}
  0x2b   :  { %s3054_s21 = scalar_lea.vmem %s41_s13, 5952  ;;  %p3059_p6 = scmp.lt.s32.totalorder %s41_s13, %s41_s13 }
  0x2c   :  { %p3055_p5 = scmp.ne.s32.totalorder %s41_s13, %s3054_s21  ;;  %p3060_p7 = scmp.lt.s32.totalorder %s3054_s21, %s3054_s21 }
  0x2e   :  { %p3061_p8 = por %p3060_p7, %p3059_p6 }
  0x30   :  { %p3062_p9 = pnand %p3061_p8, %p3055_p5 }
  0x32   :  { %3065 = shalt.err (!%p3062_p9)
}
  0x33   :  { %46 = dma.hbm_to_vmem [thread:$0]  %s3532_s2, 5952, %s41_s13, [#allocation6], %s3095_s22, %s3095_s22, %s3096_s23  }
  0x34   :  { %3088 = dma.done.wait [#allocation3], 12288  }
  0x35   :  { %3089 = vsyncadd [#allocation3], 4294955008 }
  0x36   :  { %3090 = dma.done.wait [#allocation6], 6208  }
  0x37   :  { %3091 = vsyncadd [#allocation6], 4294961088  ;;  %v3101_v0 = vmov 0   ;;  %v2754_v1 = vld [vmem:[#allocation7] sm:$0xff]   ;;  %v2755_v2 = vld [vmem:[#allocation7 + $0x8] sm:$0xff]   ;;  %vm882_vm0 = vcmask 523264  }
  0x38   :  { %979 = vmatprep.subr.bf16.mxu0 %v3101_v0  ;;  %2711 = vmatprep.subr.bf16.mxu1 %v3101_v0  ;;  %v2756_v3 = vld [vmem:[#allocation7 + $0x10] sm:$0xff]   ;;  %v2757_v4 = vld [vmem:[#allocation7 + $0x18] sm:$0xff]   ;;  %v2758_v5 = vld [vmem:[#allocation7 + $0x20] sm:$0xff]   ;;  %vm2018_vm1 = vcmask 1041409   ;;  %vm2021_vm2 = vcmask 1042434   ;;  %vm2024_vm3 = vcmask 1043459  }
  0x39   :  { %980 = vmatpush1.bf16.msra.mxu0 %v2754_v1  ;;  %2727 = vmatpush1.bf16.msra.mxu1 %v2754_v1  ;;  %v2772_v6 = vld [vmem:[#allocation2 + $0x4] ss:$12 sps:$4 sm:$0xff]   ;;  %v2759_v7 = vld [vmem:[#allocation7 + $0x28] sm:$0xff]   ;;  %v2761_v10 = vld [vmem:[#allocation7 + $0x38] sm:$0xff]   ;;  %vm2027_vm4 = vcmask 1044484   ;;  %vm2030_vm5 = vcmask 1045509  }
  0x3a   :  { %981 = vmatprep.subr.bf16.mxu0 %v3101_v0  ;;  %2712 = vmatprep.subr.bf16.mxu1 %v3101_v0  ;;  %v2775_v8 = vld [vmem:[#allocation2 + $0x28c] ss:$12 sps:$4 sm:$0xff]   ;;  %v2760_v9 = vld [vmem:[#allocation7 + $0x30] sm:$0xff]   ;;  %v2762_v11 = vld [vmem:[#allocation7 + $0x40] sm:$0xff]   ;;  %vm2033_vm6 = vcmask 1046534   ;;  %vm2036_vm7 = vcmask 1047559  }
  0x3b   :  { %1011 = vmatprep.mubr.bf16.mxu0 %v2772_v6  ;;  %1227 = vmatprep.mubr.bf16.mxu1 %v2775_v8  ;;  %v2763_v12 = vld [vmem:[#allocation7 + $0x48] sm:$0xff]   ;;  %v2764_v13 = vld [vmem:[#allocation7 + $0x50] sm:$0xff]   ;;  %v2765_v14 = vld [vmem:[#allocation7 + $0x58] sm:$0xff]   ;;  %s3102_s2 = smov [#allocation8]  }
  0x3c   :  { %v2766_v15 = vld [vmem:[#allocation7 + $0x60] sm:$0xff]   ;;  %v2767_v16 = vld [vmem:[#allocation7 + $0x68] sm:$0xff]   ;;  %v2768_v17 = vld [vmem:[#allocation7 + $0x70] sm:$0xff]   ;;  %s2358_s22 = sshll.u32 %s3102_s2, 4  ;;  %s2359_s22 = int_to_ptr.vmem [resolvable:$true] %s2358_s22 }
  0x3d   :  { %982 = vmatpush1.bf16.msra.mxu0 %v2755_v2  ;;  %2728 = vmatpush1.bf16.msra.mxu1 %v2755_v2  ;;  %v2769_v18 = vld [vmem:[#allocation7 + $0x78] sm:$0xff]   ;;  %v2794_v20 = vld [vmem:[#allocation7 + $0x80] sm:$0xff]   ;;  %v2795_v24 = vld [vmem:[#allocation7 + $0x88] sm:$0xff]   ;;  %s3066_s23 = scalar_lea.vmem %s2359_s22, 512  ;;  %p3071_p11 = scmp.lt.s32.totalorder %s2359_s22, %s2359_s22 }
  0x3e   :  { %983 = vmatprep.subr.bf16.mxu0 %v3101_v0  ;;  %2713 = vmatprep.subr.bf16.mxu1 %v3101_v0  ;;  %v2770_v19 = vld [vmem:[#allocation2] ss:$12 sps:$4 sm:$0xff]   ;;  %v2773_v21 = vld [vmem:[#allocation2 + $0x288] ss:$12 sps:$4 sm:$0xff]   ;;  %v2778_v23 = vld [vmem:[#allocation2 + $0x2a4] ss:$12 sps:$4 sm:$0xff]   ;;  %p3067_p10 = scmp.ne.s32.totalorder %s2359_s22, %s3066_s23  ;;  %p3072_p12 = scmp.lt.s32.totalorder %s3066_s23, %s3066_s23 }
  0x3f   :  { %v2776_v22 = vld [vmem:[#allocation2 + $0x1c] ss:$12 sps:$4 sm:$0xff]   ;;  %v2780_v25 = vld [vmem:[#allocation2 + $0x18] ss:$12 sps:$4 sm:$0xff]   ;;  %v2781_v26 = vld [vmem:[#allocation2 + $0x2a0] ss:$12 sps:$4 sm:$0xff]  }
  0x40   :  { %v2802_v27 = vld [vmem:[#allocation7 + $0x90] sm:$0xff]   ;;  %v2784_v29 = vld [vmem:[#allocation2 + $0x2bc] ss:$12 sps:$4 sm:$0xff]   ;;  %v2788_v33 = vld [vmem:[#allocation2 + $0x4c] ss:$12 sps:$4 sm:$0xff]   ;;  %p3073_p13 = por %p3072_p12, %p3071_p11 }
  0x41   :  { %984 = vmatpush1.bf16.msra.mxu0 %v2756_v3  ;;  %2729 = vmatpush1.bf16.msra.mxu1 %v2756_v3  ;;  %v2782_v28 = vld [vmem:[#allocation2 + $0x34] ss:$12 sps:$4 sm:$0xff]   ;;  %v2803_v30 = vld [vmem:[#allocation7 + $0x98] sm:$0xff]   ;;  %v2786_v31 = vld [vmem:[#allocation2 + $0x30] ss:$12 sps:$4 sm:$0xff]  }
  0x42   :  { %985 = vmatprep.subr.bf16.mxu0 %v3101_v0  ;;  %2714 = vmatprep.subr.bf16.mxu1 %v3101_v0  ;;  %v2787_v32 = vld [vmem:[#allocation2 + $0x2b8] ss:$12 sps:$4 sm:$0xff]   ;;  %v2790_v34 = vld [vmem:[#allocation2 + $0x2d4] ss:$12 sps:$4 sm:$0xff]   ;;  %v2793_v36 = vld [vmem:[#allocation2 + $0x2d0] ss:$12 sps:$4 sm:$0xff]   ;;  %p3074_p0 = pnand %p3073_p13, %p3067_p10 }
  0x43   :  { %v2792_v35 = vld [vmem:[#allocation2 + $0x48] ss:$12 sps:$4 sm:$0xff]   ;;  %v2796_v37 = vld [vmem:[#allocation2 + $0x64] ss:$12 sps:$4 sm:$0xff]   ;;  %v2798_v38 = vld [vmem:[#allocation2 + $0x2ec] ss:$12 sps:$4 sm:$0xff]  }
  0x44   :  { %v2800_v39 = vld [vmem:[#allocation2 + $0x60] ss:$12 sps:$4 sm:$0xff]   ;;  %v2801_v40 = vld [vmem:[#allocation2 + $0x2e8] ss:$12 sps:$4 sm:$0xff]   ;;  %v2807_v43 = vld [vmem:[#allocation2 + $0x78] ss:$12 sps:$4 sm:$0xff]  }
  0x45   :  { %986 = vmatpush1.bf16.msra.mxu0 %v2757_v4  ;;  %2730 = vmatpush1.bf16.msra.mxu1 %v2757_v4  ;;  %v2804_v41 = vld [vmem:[#allocation2 + $0x7c] ss:$12 sps:$4 sm:$0xff]   ;;  %v2808_v44 = vld [vmem:[#allocation2 + $0x20] ss:$12 sps:$4 sm:$0xff]   ;;  %v2811_v46 = vld [vmem:[#allocation2 + $0x38] ss:$12 sps:$4 sm:$0xff]  }
  0x46   :  { %987 = vmatprep.subr.bf16.mxu0 %v3101_v0  ;;  %2715 = vmatprep.subr.bf16.mxu1 %v3101_v0  ;;  %v2806_v42 = vld [vmem:[#allocation2 + $0x8] ss:$12 sps:$4 sm:$0xff]   ;;  %v2812_v47 = vld [vmem:[#allocation2 + $0x90] ss:$12 sps:$4 sm:$0xff]   ;;  %v2814_v49 = vld [vmem:[#allocation2 + $0xac] ss:$12 sps:$4 sm:$0xff]  }
  0x47   :  { %v2809_v45 = vld [vmem:[#allocation2 + $0x94] ss:$12 sps:$4 sm:$0xff]   ;;  %v2813_v48 = vld [vmem:[#allocation2 + $0x50] ss:$12 sps:$4 sm:$0xff]   ;;  %v2821_v54 = vld [vmem:[#allocation2 + $0x98] ss:$12 sps:$4 sm:$0xff]  }
  0x48   :  { %v2816_v50 = vld [vmem:[#allocation2 + $0x68] ss:$12 sps:$4 sm:$0xff]   ;;  %v2818_v52 = vld [vmem:[#allocation2 + $0x80] ss:$12 sps:$4 sm:$0xff]   ;;  %v2819_v53 = vld [vmem:[#allocation2 + $0xc4] ss:$12 sps:$4 sm:$0xff]  }
  0x49   :  { %988 = vmatpush1.bf16.msra.mxu0 %v2758_v5  ;;  %2731 = vmatpush1.bf16.msra.mxu1 %v2758_v5  ;;  %v2817_v51 = vld [vmem:[#allocation2 + $0xa8] ss:$12 sps:$4 sm:$0xff]   ;;  %v2822_v55 = vld [vmem:[#allocation2 + $0xc0] ss:$12 sps:$4 sm:$0xff]   ;;  %v2823_v56 = vld [vmem:[#allocation2 + $0xb0] ss:$12 sps:$4 sm:$0xff]  }
  0x4a   :  { %989 = vmatprep.subr.bf16.mxu0 %v3101_v0  ;;  %2716 = vmatprep.subr.bf16.mxu1 %v3101_v0  ;;  %v2824_v57 = vld [vmem:[#allocation2 + $0xdc] ss:$12 sps:$4 sm:$0xff]   ;;  %v2827_v59 = vld [vmem:[#allocation2 + $0xd8] ss:$12 sps:$4 sm:$0xff]   ;;  %v2828_v60 = vld [vmem:[#allocation2 + $0xe0] ss:$12 sps:$4 sm:$0xff]  }
  0x4b   :  { %v2826_v58 = vld [vmem:[#allocation2 + $0xc8] ss:$12 sps:$4 sm:$0xff]   ;;  %v2831_v62 = vld [vmem:[#allocation2 + $0xf8] ss:$12 sps:$4 sm:$0xff]   ;;  %v2832_v63 = vld [vmem:[#allocation2 + $0xf0] ss:$12 sps:$4 sm:$0xff]  }
  0x4c   :  { %v2829_v61 = vld [vmem:[#allocation2 + $0xf4] ss:$12 sps:$4 sm:$0xff]   ;;  %v2834_v1 = vld [vmem:[#allocation2 + $0x10c] ss:$12 sps:$4 sm:$0xff]   ;;  %v2839_v5 = vld [vmem:[#allocation2 + $0x124] ss:$12 sps:$4 sm:$0xff]  }
  0x4d   :  { %990 = vmatpush1.bf16.msra.mxu0 %v2759_v7  ;;  %2732 = vmatpush1.bf16.msra.mxu1 %v2759_v7  ;;  %v2836_v2 = vld [vmem:[#allocation2 + $0x128] ss:$12 sps:$4 sm:$0xff]   ;;  %v2838_v4 = vld [vmem:[#allocation2 + $0x140] ss:$12 sps:$4 sm:$0xff]   ;;  %v2841_v6 = vld [vmem:[#allocation2 + $0x158] ss:$12 sps:$4 sm:$0xff]  }
  0x4e   :  { %991 = vmatprep.subr.bf16.mxu0 %v3101_v0  ;;  %2717 = vmatprep.subr.bf16.mxu1 %v3101_v0  ;;  %v2837_v3 = vld [vmem:[#allocation2 + $0x108] ss:$12 sps:$4 sm:$0xff]   ;;  %v2842_v7 = vld [vmem:[#allocation2 + $0x120] ss:$12 sps:$4 sm:$0xff]   ;;  %v2843_v8 = vld [vmem:[#allocation2 + $0x170] ss:$12 sps:$4 sm:$0xff]  }
  0x51   :  { %992 = vmatpush1.bf16.msra.mxu0 %v2760_v9  ;;  %2733 = vmatpush1.bf16.msra.mxu1 %v2760_v9  ;;  %v2844_v9 = vld [vmem:[#allocation2 + $0x13c] ss:$12 sps:$4 sm:$0xff]  }
  0x52   :  { %993 = vmatprep.subr.bf16.mxu0 %v3101_v0  ;;  %2718 = vmatprep.subr.bf16.mxu1 %v3101_v0 }
  0x55   :  { %994 = vmatpush1.bf16.msra.mxu0 %v2761_v10  ;;  %2734 = vmatpush1.bf16.msra.mxu1 %v2761_v10  ;;  %v2846_v10 = vld [vmem:[#allocation2 + $0x188] ss:$12 sps:$4 sm:$0xff]  }
  0x56   :  { %995 = vmatprep.subr.bf16.mxu0 %v3101_v0  ;;  %2719 = vmatprep.subr.bf16.mxu1 %v3101_v0 }
  0x59   :  { %996 = vmatpush1.bf16.msra.mxu0 %v2762_v11  ;;  %2735 = vmatpush1.bf16.msra.mxu1 %v2762_v11  ;;  %v2847_v11 = vld [vmem:[#allocation2 + $0x138] ss:$12 sps:$4 sm:$0xff]  }
  0x5a   :  { %997 = vmatprep.subr.bf16.mxu0 %v3101_v0  ;;  %2720 = vmatprep.subr.bf16.mxu1 %v3101_v0 }
  0x5d   :  { %998 = vmatpush1.bf16.msra.mxu0 %v2763_v12  ;;  %2736 = vmatpush1.bf16.msra.mxu1 %v2763_v12  ;;  %v2848_v12 = vld [vmem:[#allocation2 + $0x1a0] ss:$12 sps:$4 sm:$0xff]  }
  0x5e   :  { %999 = vmatprep.subr.bf16.mxu0 %v3101_v0  ;;  %2721 = vmatprep.subr.bf16.mxu1 %v3101_v0 }
  0x61   :  { %1000 = vmatpush1.bf16.msra.mxu0 %v2764_v13  ;;  %2737 = vmatpush1.bf16.msra.mxu1 %v2764_v13  ;;  %v2849_v13 = vld [vmem:[#allocation2 + $0x154] ss:$12 sps:$4 sm:$0xff]  }
  0x62   :  { %1001 = vmatprep.subr.bf16.mxu0 %v3101_v0  ;;  %2722 = vmatprep.subr.bf16.mxu1 %v3101_v0 }
  0x65   :  { %1002 = vmatpush1.bf16.msra.mxu0 %v2765_v14  ;;  %2738 = vmatpush1.bf16.msra.mxu1 %v2765_v14  ;;  %v2851_v14 = vld [vmem:[#allocation2 + $0x1b8] ss:$12 sps:$4 sm:$0xff]  }
  0x66   :  { %1003 = vmatprep.subr.bf16.mxu0 %v3101_v0  ;;  %2723 = vmatprep.subr.bf16.mxu1 %v3101_v0 }
  0x69   :  { %1004 = vmatpush1.bf16.msra.mxu0 %v2766_v15  ;;  %2739 = vmatpush1.bf16.msra.mxu1 %v2766_v15  ;;  %v2852_v15 = vld [vmem:[#allocation2 + $0x150] ss:$12 sps:$4 sm:$0xff]  }
  0x6a   :  { %1005 = vmatprep.subr.bf16.mxu0 %v3101_v0  ;;  %2724 = vmatprep.subr.bf16.mxu1 %v3101_v0 }
  0x6d   :  { %1006 = vmatpush1.bf16.msra.mxu0 %v2767_v16  ;;  %2740 = vmatpush1.bf16.msra.mxu1 %v2767_v16  ;;  %v2853_v16 = vld [vmem:[#allocation2 + $0x1d0] ss:$12 sps:$4 sm:$0xff]  }
  0x6e   :  { %1007 = vmatprep.subr.bf16.mxu0 %v3101_v0  ;;  %2725 = vmatprep.subr.bf16.mxu1 %v3101_v0 }
  0x71   :  { %1008 = vmatpush1.bf16.msra.mxu0 %v2768_v17  ;;  %2741 = vmatpush1.bf16.msra.mxu1 %v2768_v17  ;;  %v2854_v17 = vld [vmem:[#allocation2 + $0x16c] ss:$12 sps:$4 sm:$0xff]  }
  0x72   :  { %1009 = vmatprep.subr.bf16.mxu0 %v3101_v0  ;;  %2726 = vmatprep.subr.bf16.mxu1 %v3101_v0  ;;  %v2833_v0 = vld [vmem:[#allocation2 + $0x110] ss:$12 sps:$4 sm:$0xff]  }
  0x75   :  { %1010 = vmatpush1.bf16.msra.mxu0 %v2769_v18  ;;  %2742 = vmatpush1.bf16.msra.mxu1 %v2769_v18  ;;  %v2856_v18 = vld [vmem:[#allocation2 + $0x1e8] ss:$12 sps:$4 sm:$0xff]  }
  0x76   :  { %2619 = vmatprep.subr.bf16.mxu1 %v2794_v20 }
  0x78   :  { %1012 = vmatmul.mubr.bf16.vlgmr.msra.gmra.mrb[0].mxu0 %v2770_v19  ;;  %1228 = vmatmul.mubr.bf16.vlgmr.msra.gmra.mrb[0].mxu1 %v2773_v21  ;;  %v2857_v19 = vld [vmem:[#allocation2 + $0x168] ss:$12 sps:$4 sm:$0xff]   ;;  %v2859_v21 = vld [vmem:[#allocation2 + $0x184] ss:$12 sps:$4 sm:$0xff]  }
  0x79   :  { %1019 = vmatprep.mubr.bf16.mxu0 %v2776_v22  ;;  %1235 = vmatprep.mubr.bf16.mxu1 %v2778_v23  ;;  %v2861_v22 = vld [vmem:[#allocation2 + $0x218] ss:$12 sps:$4 sm:$0xff]   ;;  %v2862_v23 = vld [vmem:[#allocation2 + $0x180] ss:$12 sps:$4 sm:$0xff]  }
  0x7a   :  { %2620 = vmatpush3.bf16.msra.mxu1 %v2794_v20  ;;  %v2858_v20 = vld [vmem:[#allocation2 + $0x200] ss:$12 sps:$4 sm:$0xff]  }
  0x7b   :  { %2621 = vmatprep.subr.bf16.mxu1 %v2795_v24 }
  0x7e   :  { %2622 = vmatpush3.bf16.msra.mxu1 %v2795_v24  ;;  %v2863_v24 = vld [vmem:[#allocation2 + $0x230] ss:$12 sps:$4 sm:$0xff]  }
  0x7f   :  { %2623 = vmatprep.subr.bf16.mxu1 %v2802_v27 }
  0x80   :  { %1020 = vmatmul.mubr.bf16.gmra.mrb[4].mxu0 %v2780_v25  ;;  %1236 = vmatmul.mubr.bf16.gmra.mrb[4].mxu1 %v2781_v26  ;;  %v2864_v25 = vld [vmem:[#allocation2 + $0x19c] ss:$12 sps:$4 sm:$0xff]  }
  0x81   :  { %1027 = vmatprep.mubr.bf16.mxu0 %v2782_v28  ;;  %1243 = vmatprep.mubr.bf16.mxu1 %v2784_v29  ;;  %v2866_v26 = vld [vmem:[#allocation2 + $0x248] ss:$12 sps:$4 sm:$0xff]   ;;  %v2868_v28 = vld [vmem:[#allocation2 + $0x260] ss:$12 sps:$4 sm:$0xff]  }
  0x82   :  { %2624 = vmatpush3.bf16.msra.mxu1 %v2802_v27  ;;  %v2867_v27 = vld [vmem:[#allocation2 + $0x198] ss:$12 sps:$4 sm:$0xff]   ;;  %v2869_v29 = vld [vmem:[#allocation2 + $0x1b4] ss:$12 sps:$4 sm:$0xff]  }
  0x83   :  { %2625 = vmatprep.subr.bf16.mxu1 %v2803_v30 }
  0x86   :  { %2626 = vmatpush3.bf16.msra.mxu1 %v2803_v30  ;;  %v2871_v30 = vld [vmem:[#allocation2 + $0x278] ss:$12 sps:$4 sm:$0xff]  }
  0x88   :  { %1028 = vmatmul.mubr.bf16.gmra.mrb[8].mxu0 %v2786_v31  ;;  %1244 = vmatmul.mubr.bf16.gmra.mrb[8].mxu1 %v2787_v32  ;;  %v2872_v31 = vld [vmem:[#allocation2 + $0x1b0] ss:$12 sps:$4 sm:$0xff]  }
  0x89   :  { %1035 = vmatprep.mubr.bf16.mxu0 %v2788_v33  ;;  %1251 = vmatprep.mubr.bf16.mxu1 %v2790_v34  ;;  %v2873_v32 = vld [vmem:[#allocation2 + $0x290] ss:$12 sps:$4 sm:$0xff]   ;;  %v2874_v33 = vld [vmem:[#allocation2 + $0x1cc] ss:$12 sps:$4 sm:$0xff]   ;;  %v2876_v34 = vld [vmem:[#allocation2 + $0x2a8] ss:$12 sps:$4 sm:$0xff]  }
  0x90   :  { %1036 = vmatmul.mubr.bf16.gmra.mrb[12].mxu0 %v2792_v35  ;;  %1252 = vmatmul.mubr.bf16.gmra.mrb[12].mxu1 %v2793_v36  ;;  %v2877_v35 = vld [vmem:[#allocation2 + $0x1c8] ss:$12 sps:$4 sm:$0xff]   ;;  %v2878_v36 = vld [vmem:[#allocation2 + $0x2c0] ss:$12 sps:$4 sm:$0xff]  }
  0x91   :  { %1043 = vmatprep.mubr.bf16.mxu0 %v2796_v37  ;;  %1259 = vmatprep.mubr.bf16.mxu1 %v2798_v38  ;;  %v2879_v37 = vld [vmem:[#allocation2 + $0x1e4] ss:$12 sps:$4 sm:$0xff]  }
  0x92   :  { %v2881_v38 = vld [vmem:[#allocation2 + $0x2d8] ss:$12 sps:$4 sm:$0xff]  }
  0x98   :  { %1044 = vmatmul.mubr.bf16.gmra.mrb[16].mxu0 %v2800_v39  ;;  %1260 = vmatmul.mubr.bf16.gmra.mrb[16].mxu1 %v2801_v40  ;;  %v2882_v39 = vld [vmem:[#allocation2 + $0x1e0] ss:$12 sps:$4 sm:$0xff]   ;;  %v2883_v40 = vld [vmem:[#allocation2 + $0x2f0] ss:$12 sps:$4 sm:$0xff]  }
  0x99   :  { %1051 = vmatprep.mubr.bf16.mxu0 %v2804_v41  ;;  %2627 = vmatprep.mubr.msk.bf16.mxu1 %vm882_vm0, %v2806_v42  ;;  %v2884_v41 = vld [vmem:[#allocation2 + $0x1fc] ss:$12 sps:$4 sm:$0xff]   ;;  %v2886_v42 = vld [vmem:[#allocation2 + $0x1f8] ss:$12 sps:$4 sm:$0xff]  }
  0xa0   :  { %1052 = vmatmul.mubr.bf16.gmra.mrb[20].mxu0 %v2807_v43  ;;  %2628 = vmatmul.mubr.msk.bf16.vlgmr.msra.gmra.mrb[20].mxu1 %vm882_vm0, %v2808_v44  ;;  %v2887_v43 = vld [vmem:[#allocation2 + $0x214] ss:$12 sps:$4 sm:$0xff]   ;;  %v2889_v44 = vld [vmem:[#allocation2 + $0x210] ss:$12 sps:$4 sm:$0xff]  }
  0xa1   :  { %1059 = vmatprep.mubr.bf16.mxu0 %v2809_v45  ;;  %2631 = vmatprep.mubr.msk.bf16.mxu1 %vm882_vm0, %v2811_v46  ;;  %v2890_v45 = vld [vmem:[#allocation2 + $0x22c] ss:$12 sps:$4 sm:$0xff]   ;;  %v2892_v46 = vld [vmem:[#allocation2 + $0x228] ss:$12 sps:$4 sm:$0xff]  }
  0xa8   :  { %1060 = vmatmul.mubr.bf16.gmra.mrb[24].mxu0 %v2812_v47  ;;  %2632 = vmatmul.mubr.msk.bf16.gmra.mrb[24].mxu1 %vm882_vm0, %v2813_v48  ;;  %v2893_v47 = vld [vmem:[#allocation2 + $0x244] ss:$12 sps:$4 sm:$0xff]   ;;  %v2895_v48 = vld [vmem:[#allocation2 + $0x240] ss:$12 sps:$4 sm:$0xff]  }
  0xa9   :  { %1067 = vmatprep.mubr.bf16.mxu0 %v2814_v49  ;;  %2635 = vmatprep.mubr.msk.bf16.mxu1 %vm882_vm0, %v2816_v50  ;;  %v2896_v49 = vld [vmem:[#allocation2 + $0x25c] ss:$12 sps:$4 sm:$0xff]   ;;  %v2898_v50 = vld [vmem:[#allocation2 + $0x258] ss:$12 sps:$4 sm:$0xff]  }
  0xb0   :  { %1068 = vmatmul.mubr.bf16.gmra.mrb[28].mxu0 %v2817_v51  ;;  %2636 = vmatmul.mubr.msk.bf16.gmra.mrb[28].mxu1 %vm882_vm0, %v2818_v52  ;;  %v2899_v51 = vld [vmem:[#allocation2 + $0x274] ss:$12 sps:$4 sm:$0xff]   ;;  %v2901_v52 = vld [vmem:[#allocation2 + $0x270] ss:$12 sps:$4 sm:$0xff]  }
  0xb1   :  { %1075 = vmatprep.mubr.bf16.mxu0 %v2819_v53  ;;  %2639 = vmatprep.mubr.msk.bf16.mxu1 %vm882_vm0, %v2821_v54 }
  0xb8   :  { %1076 = vmatmul.mubr.bf16.gmra.mrb[32].mxu0 %v2822_v55  ;;  %2640 = vmatmul.mubr.msk.bf16.gmra.mrb[32].mxu1 %vm882_vm0, %v2823_v56 }
  0xb9   :  { %1083 = vmatprep.mubr.bf16.mxu0 %v2824_v57  ;;  %2643 = vmatprep.mubr.msk.bf16.mxu1 %vm882_vm0, %v2826_v58 }
  0xc0   :  { %1084 = vmatmul.mubr.bf16.gmra.mrb[36].mxu0 %v2827_v59  ;;  %2644 = vmatmul.mubr.msk.bf16.gmra.mrb[36].mxu1 %vm882_vm0, %v2828_v60 }
  0xc1   :  { %1091 = vmatprep.mubr.bf16.mxu0 %v2829_v61  ;;  %2647 = vmatprep.mubr.msk.bf16.mxu1 %vm882_vm0, %v2831_v62 }
  0xc8   :  { %1092 = vmatmul.mubr.bf16.gmra.mrb[40].mxu0 %v2832_v63  ;;  %2648 = vmatmul.mubr.msk.bf16.gmra.mrb[40].mxu1 %vm882_vm0, %v2833_v0 }
  0xc9   :  { %1099 = vmatprep.mubr.bf16.mxu0 %v2834_v1  ;;  %2651 = vmatprep.mubr.msk.bf16.mxu1 %vm882_vm0, %v2836_v2 }
  0xd0   :  { %1100 = vmatmul.mubr.bf16.gmra.mrb[44].mxu0 %v2837_v3  ;;  %2652 = vmatmul.mubr.msk.bf16.gmra.mrb[44].mxu1 %vm882_vm0, %v2838_v4 }
  0xd1   :  { %1107 = vmatprep.mubr.bf16.mxu0 %v2839_v5  ;;  %2655 = vmatprep.mubr.msk.bf16.mxu1 %vm882_vm0, %v2841_v6 }
  0xd8   :  { %1108 = vmatmul.mubr.bf16.gmra.mrb[48].mxu0 %v2842_v7  ;;  %2656 = vmatmul.mubr.msk.bf16.gmra.mrb[48].mxu1 %vm882_vm0, %v2843_v8  ;;  %v2902_v7 = vld [vmem:[#allocation7 + $0xa4] sm:$0xff]  }
  0xd9   :  { %1115 = vmatprep.mubr.bf16.mxu0 %v2844_v9  ;;  %2659 = vmatprep.mubr.msk.bf16.mxu1 %vm882_vm0, %v2846_v10 }
  0xda   :  { %2691 = vmatprep.subr.bf16.mxu1 %v2902_v7 }
  0xdb   :  { %2692 = vmatpush3.bf16.msra.mxu1 %v2902_v7 }
  0xe0   :  { %1116 = vmatmul.mubr.bf16.gmra.mrb[52].mxu0 %v2847_v11  ;;  %2660 = vmatmul.mubr.msk.bf16.gmra.mrb[52].mxu1 %vm882_vm0, %v2848_v12 }
  0xe1   :  { %1123 = vmatprep.mubr.bf16.mxu0 %v2849_v13  ;;  %2663 = vmatprep.mubr.msk.bf16.mxu1 %vm882_vm0, %v2851_v14 }
  0xe8   :  { %1124 = vmatmul.mubr.bf16.gmra.mrb[56].mxu0 %v2852_v15  ;;  %2664 = vmatmul.mubr.msk.bf16.gmra.mrb[56].mxu1 %vm882_vm0, %v2853_v16 }
  0xe9   :  { %1131 = vmatprep.mubr.bf16.mxu0 %v2854_v17  ;;  %2667 = vmatprep.mubr.msk.bf16.mxu1 %vm882_vm0, %v2856_v18 }
  0xf0   :  { %1132 = vmatmul.mubr.bf16.gmra.mrb[60].mxu0 %v2857_v19  ;;  %2668 = vmatmul.mubr.msk.bf16.gmra.mrb[60].mxu1 %vm882_vm0, %v2858_v20 }
  0xf1   :  { %1139 = vmatprep.mubr.bf16.mxu0 %v2859_v21  ;;  %2671 = vmatprep.mubr.msk.bf16.mxu1 %vm882_vm0, %v2861_v22 }
  0xf8   :  { %1140 = vmatmul.mubr.bf16.gmra.mrb[64].mxu0 %v2862_v23  ;;  %2672 = vmatmul.mubr.msk.bf16.gmra.mrb[64].mxu1 %vm882_vm0, %v2863_v24 }
  0xf9   :  { %1147 = vmatprep.mubr.bf16.mxu0 %v2864_v25  ;;  %2675 = vmatprep.mubr.msk.bf16.mxu1 %vm882_vm0, %v2866_v26 }
 0x100   :  { %1148 = vmatmul.mubr.bf16.gmra.mrb[68].mxu0 %v2867_v27  ;;  %2676 = vmatmul.mubr.msk.bf16.gmra.mrb[68].mxu1 %vm882_vm0, %v2868_v28 }
 0x101   :  { %1155 = vmatprep.mubr.bf16.mxu0 %v2869_v29  ;;  %2679 = vmatprep.mubr.msk.bf16.mxu1 %vm882_vm0, %v2871_v30  ;;  %v148_v30 = vld [vmem:[#allocation7 + $0x16c] sm:$0xff]  }
 0x108   :  { %1156 = vmatmul.mubr.bf16.gmra.mrb[72].mxu0 %v2872_v31  ;;  %2680 = vmatmul.mubr.msk.bf16.gmra.mrb[72].mxu1 %vm882_vm0, %v2873_v32 }
 0x109   :  { %1163 = vmatprep.mubr.bf16.mxu0 %v2874_v33  ;;  %2683 = vmatprep.mubr.msk.bf16.mxu1 %vm882_vm0, %v2876_v34  ;;  %v3257_v34 = vunpack.c.l.bf16 %v148_v30 }
 0x110   :  { %1164 = vmatmul.mubr.bf16.gmra.mrb[76].mxu0 %v2877_v35  ;;  %2684 = vmatmul.mubr.msk.bf16.gmra.mrb[76].mxu1 %vm882_vm0, %v2878_v36 }
 0x111   :  { %1171 = vmatprep.mubr.bf16.mxu0 %v2879_v37  ;;  %2687 = vmatprep.mubr.msk.bf16.mxu1 %vm882_vm0, %v2881_v38  ;;  %v3259_v37 = vunpack.c.h.bf16 %v148_v30 }
 0x118   :  { %1172 = vmatmul.mubr.bf16.gmra.mrb[80].mxu0 %v2882_v39  ;;  %2688 = vmatmul.mubr.msk.bf16.gmra.mrb[80].mxu1 %vm882_vm0, %v2883_v40 }
 0x119   :  { %1179 = vmatprep.mubr.bf16.mxu0 %v2884_v41 }
 0x120   :  { %1180 = vmatmul.mubr.bf16.gmra.mrb[84].mxu0 %v2886_v42 }
 0x121   :  { %1187 = vmatprep.mubr.bf16.mxu0 %v2887_v43 }
 0x128   :  { %1188 = vmatmul.mubr.bf16.gmra.mrb[88].mxu0 %v2889_v44 }
 0x129   :  { %1195 = vmatprep.mubr.bf16.mxu0 %v2890_v45 }
 0x130   :  { %1196 = vmatmul.mubr.bf16.gmra.mrb[92].mxu0 %v2892_v46 }
 0x131   :  { %1203 = vmatprep.mubr.bf16.mxu0 %v2893_v47  ;;  %v1848_v47 = vlaneseq }
 0x138   :  { %1204 = vmatmul.mubr.bf16.gmra.mrb[96].mxu0 %v2895_v48 }
 0x139   :  { %1211 = vmatprep.mubr.bf16.mxu0 %v2896_v49 }
 0x140   :  { %1212 = vmatmul.mubr.bf16.gmra.mrb[100].mxu0 %v2898_v50 }
 0x141   :  { %1219 = vmatprep.mubr.bf16.mxu0 %v2899_v51 }
 0x148   :  { %1220 = vmatmul.mubr.bf16.gmra.mrb[104].mxu0 %v2901_v52 }
 0x14b   :  { %v1013_v53 = vpop.f32.mrb[0].mxu0  ;;  %v3231_v54 = vpop.f32.mrb[0].mxu1 }
 0x14c   :  { %v1015_v55 = vpop.f32.mrb[1].mxu0  ;;  %v1231_v56 = vpop.f32.mrb[1].mxu1 }
 0x14d   :  { %v1016_v57 = vpop.f32.mrb[2].mxu0  ;;  %v3233_v58 = vpop.f32.mrb[2].mxu1  ;;  %v2903_v55 = vld [vmem:[#allocation7 + $0xac] sm:$0xff]   ;;  %v97_v56 = vld [vmem:[#allocation7 + $0xa0] sm:$0x1] }
 0x14e   :  { %v1018_v59 = vpop.f32.mrb[3].mxu0  ;;  %v1234_v60 = vpop.f32.mrb[3].mxu1  ;;  %2693 = vmatprep.subr.bf16.mxu1 %v2903_v55 }
 0x14f   :  { %v1849_v60 = vshrl.u32 %v1848_v47, 7  ;;  %2694 = vmatpush3.bf16.msra.mxu1 %v2903_v55 }
 0x153   :  { %v1021_v61 = vpop.f32.mrb[4].mxu0  ;;  %v3235_v62 = vpop.f32.mrb[4].mxu1 }
 0x154   :  { %v1023_v63 = vpop.f32.mrb[5].mxu0  ;;  %v1239_v0 = vpop.f32.mrb[5].mxu1 }
 0x155   :  { %v1024_v1 = vpop.f32.mrb[6].mxu0  ;;  %v3237_v2 = vpop.f32.mrb[6].mxu1 }
 0x156   :  { %v1026_v3 = vpop.f32.mrb[7].mxu0  ;;  %v1242_v4 = vpop.f32.mrb[7].mxu1 }
 0x15b   :  { %v1029_v5 = vpop.f32.mrb[8].mxu0  ;;  %v3239_v6 = vpop.f32.mrb[8].mxu1 }
 0x15c   :  { %v1031_v8 = vpop.f32.mrb[9].mxu0  ;;  %v1247_v9 = vpop.f32.mrb[9].mxu1 }
 0x15d   :  { %v3241_v10 = vpop.f32.mrb[10].mxu0  ;;  %v3243_v11 = vpop.f32.mrb[10].mxu1 }
 0x15e   :  { %v1034_v12 = vpop.f32.mrb[11].mxu0  ;;  %v1250_v13 = vpop.f32.mrb[11].mxu1 }
 0x15f   :  { %v1847_v13 = vunpack.c.l.bf16 %v97_v56 }
 0x163   :  { %v1037_v14 = vpop.f32.mrb[12].mxu0  ;;  %v3245_v15 = vpop.f32.mrb[12].mxu1 }
 0x164   :  { %v1039_v16 = vpop.f32.mrb[13].mxu0  ;;  %v1255_v17 = vpop.f32.mrb[13].mxu1 }
 0x165   :  { %v1040_v18 = vpop.f32.mrb[14].mxu0  ;;  %v3247_v19 = vpop.f32.mrb[14].mxu1 }
 0x166   :  { %v1042_v20 = vpop.f32.mrb[15].mxu0  ;;  %v1258_v21 = vpop.f32.mrb[15].mxu1 }
 0x167   :  { %v3270_v21 = vsub.s32 0, %v1849_v60 }
 0x16b   :  { %v3249_v22 = vpop.f32.mrb[16].mxu0  ;;  %v3251_v23 = vpop.f32.mrb[16].mxu1 }
 0x16c   :  { %v1047_v24 = vpop.f32.mrb[17].mxu0  ;;  %v1263_v25 = vpop.f32.mrb[17].mxu1 }
 0x16d   :  { %v3253_v26 = vpop.f32.mrb[18].mxu0  ;;  %v3255_v27 = vpop.f32.mrb[18].mxu1 }
 0x16e   :  { %v1050_v28 = vpop.f32.mrb[19].mxu0  ;;  %v1266_v29 = vpop.f32.mrb[19].mxu1 }
 0x173   :  { %v1053_v31 = vpop.f32.mrb[20].mxu0  ;;  %v2629_v32 = vpop.f32.mrb[20].mxu1 }
 0x174   :  { %v1311_v33 = vadd.f32 %v2629_v32, %v1021_v61  ;;  %v1055_v35 = vpop.f32.mrb[21].mxu0  ;;  %v1302_v36 = vpop.f32.mrb[21].mxu1 }
 0x175   :  { %v1303_v38 = vadd.f32 %v1302_v36, %v1013_v53  ;;  %v1056_v39 = vpop.f32.mrb[22].mxu0  ;;  %v2630_v40 = vpop.f32.mrb[22].mxu1 }
 0x176   :  { %v1314_v41 = vadd.f32 %v2630_v40, %v1024_v1  ;;  %v1058_v42 = vpop.f32.mrb[23].mxu0  ;;  %v1305_v43 = vpop.f32.mrb[23].mxu1  ;;  %v1561_v45 = vadd.f32 %v3257_v34, %v1311_v33 }
 0x177   :  { %v1306_v44 = vadd.f32 %v1305_v43, %v1016_v57  ;;  %v1559_v48 = vadd.f32 %v3257_v34, %v1303_v38 }
 0x178   :  { %v1562_v46 = vadd.f32 %v3259_v37, %v1314_v41 }
 0x179   :  { %v1560_v49 = vadd.f32 %v3259_v37, %v1306_v44 }
 0x17a   :  { %v1630_v50 = vmax.f32 %v1561_v45, %v1562_v46 }
 0x17b   :  { %v1623_v51 = vmax.f32 %v1559_v48, %v1560_v49  ;;  %v3265_v52 = vpop.f32.mrb[24].mxu0  ;;  %v2633_v53 = vpop.f32.mrb[24].mxu1 }
 0x17c   :  { %v1631_v59 = vrot.slane %v1630_v50, 4  ;;  %v1327_v61 = vadd.f32 %v2633_v53, %v1037_v14  ;;  %v1063_v57 = vpop.f32.mrb[25].mxu0  ;;  %v1318_v63 = vpop.f32.mrb[25].mxu1 }
 0x17d   :  { %v1624_v0 = vrot.slane %v1623_v51, 4  ;;  %v1319_v1 = vadd.f32 %v1318_v63, %v1029_v5  ;;  %v3267_v3 = vpop.f32.mrb[26].mxu0  ;;  %v2634_v4 = vpop.f32.mrb[26].mxu1 }
 0x17e   :  { %v1632_v7 = vmax.f32 %v1630_v50, %v1631_v59  ;;  %v1330_v8 = vadd.f32 %v2634_v4, %v1040_v18  ;;  %v1066_v9 = vpop.f32.mrb[27].mxu0  ;;  %v1321_v12 = vpop.f32.mrb[27].mxu1  ;;  %v1565_v14 = vadd.f32 %v3257_v34, %v1327_v61 }
 0x17f   :  { %v1625_v16 = vmax.f32 %v1623_v51, %v1624_v0  ;;  %v1322_v17 = vadd.f32 %v1321_v12, %v3241_v10  ;;  %v1563_v25 = vadd.f32 %v3257_v34, %v1319_v1  ;;  %v3277_v10 = vrot.slane %v1847_v13, %v3270_v21  ;;  %v2904_v12 = vld [vmem:[#allocation7 + $0xb4] sm:$0xff]  }
 0x180   :  { %v1633_v20 = vrot.slane %v1632_v7, 2  ;;  %v1566_v5 = vadd.f32 %v3259_v37, %v1330_v8  ;;  %2695 = vmatprep.subr.bf16.mxu1 %v2904_v12 }
 0x181   :  { %v1626_v24 = vrot.slane %v1625_v16, 2  ;;  %v1564_v28 = vadd.f32 %v3259_v37, %v1322_v17  ;;  %2696 = vmatpush3.bf16.msra.mxu1 %v2904_v12 }
 0x182   :  { %v1634_v18 = vmax.f32 %v1632_v7, %v1633_v20  ;;  %v1644_v29 = vmax.f32 %v1565_v14, %v1566_v5 }
 0x183   :  { %v1627_v30 = vmax.f32 %v1625_v16, %v1626_v24  ;;  %v1637_v32 = vmax.f32 %v1563_v25, %v1564_v28  ;;  %v1069_v33 = vpop.f32.mrb[28].mxu0  ;;  %v2637_v35 = vpop.f32.mrb[28].mxu1 }
 0x184   :  { %v1635_v36 = vrot.slane %v1634_v18, 1  ;;  %v1645_v38 = vrot.slane %v1644_v29, 4  ;;  %v1343_v40 = vadd.f32 %v2637_v35, %v1053_v31  ;;  %v1071_v41 = vpop.f32.mrb[29].mxu0  ;;  %v1334_v42 = vpop.f32.mrb[29].mxu1 }
 0x185   :  { %v1628_v43 = vrot.slane %v1627_v30, 1  ;;  %v1638_v44 = vrot.slane %v1637_v32, 4  ;;  %v1335_v45 = vadd.f32 %v1334_v42, %v3249_v22  ;;  %v1072_v46 = vpop.f32.mrb[30].mxu0  ;;  %v2638_v47 = vpop.f32.mrb[30].mxu1 }
 0x186   :  { %v1636_v48 = vmax.f32 %v1634_v18, %v1635_v36  ;;  %v1646_v49 = vmax.f32 %v1644_v29, %v1645_v38  ;;  %v1346_v50 = vadd.f32 %v2638_v47, %v1056_v39  ;;  %v1074_v51 = vpop.f32.mrb[31].mxu0  ;;  %v1337_v53 = vpop.f32.mrb[31].mxu1  ;;  %v1569_v61 = vadd.f32 %v3257_v34, %v1343_v40 }
 0x187   :  { %v1629_v55 = vmax.f32 %v1627_v30, %v1628_v43  ;;  %v1639_v56 = vmax.f32 %v1637_v32, %v1638_v44  ;;  %v1338_v59 = vadd.f32 %v1337_v53, %v3253_v26  ;;  %v1567_v0 = vadd.f32 %v3257_v34, %v1335_v45 }
 0x188   :  { %v1853_v60 = vadd.f32 %v3277_v10, %v1636_v48  ;;  %v1647_v31 = vrot.slane %v1646_v49, 2  ;;  %v1570_v57 = vadd.f32 %v3259_v37, %v1346_v50 }
 0x189   :  { %v1852_v22 = vadd.f32 %v3277_v10, %v1629_v55  ;;  %v1640_v63 = vrot.slane %v1639_v56, 2  ;;  %v1568_v39 = vadd.f32 %v3259_v37, %v1338_v59 }
 0x18a   :  { %2928 = vtanh.f32 %v1853_v60  ;;  %v1648_v1 = vmax.f32 %v1646_v49, %v1647_v31  ;;  %v1658_v4 = vmax.f32 %v1569_v61, %v1570_v57 }
 0x18b   :  { %2930 = vtanh.f32 %v1852_v22  ;;  %v1641_v7 = vmax.f32 %v1639_v56, %v1640_v63  ;;  %v1651_v26 = vmax.f32 %v1567_v0, %v1568_v39  ;;  %v1077_v8 = vpop.f32.mrb[32].mxu0  ;;  %v2641_v9 = vpop.f32.mrb[32].mxu1 }
 0x18c   :  { %v1649_v13 = vrot.slane %v1648_v1, 1  ;;  %v1659_v16 = vrot.slane %v1658_v4, 4  ;;  %v1359_v17 = vadd.f32 %v2641_v9, %v1069_v33  ;;  %v1079_v20 = vpop.f32.mrb[33].mxu0  ;;  %v1350_v14 = vpop.f32.mrb[33].mxu1 }
 0x18d   :  { %v1642_v5 = vrot.slane %v1641_v7, 1  ;;  %v1652_v24 = vrot.slane %v1651_v26, 4  ;;  %v1351_v25 = vadd.f32 %v1350_v14, %v3265_v52  ;;  %v1080_v28 = vpop.f32.mrb[34].mxu0  ;;  %v2642_v18 = vpop.f32.mrb[34].mxu1 }
 0x18e   :  { %v1650_v29 = vmax.f32 %v1648_v1, %v1649_v13  ;;  %v1660_v30 = vmax.f32 %v1658_v4, %v1659_v16  ;;  %v1362_v32 = vadd.f32 %v2642_v18, %v1072_v46  ;;  %v1082_v35 = vpop.f32.mrb[35].mxu0  ;;  %v1353_v36 = vpop.f32.mrb[35].mxu1  ;;  %v1573_v43 = vadd.f32 %v3257_v34, %v1359_v17 }
 0x18f   :  { %v1643_v38 = vmax.f32 %v1641_v7, %v1642_v5  ;;  %v1653_v40 = vmax.f32 %v1651_v26, %v1652_v24  ;;  %v1354_v41 = vadd.f32 %v1353_v36, %v3267_v3  ;;  %v1571_v47 = vadd.f32 %v3257_v34, %v1351_v25 }
 0x190   :  { %v1855_v33 = vadd.f32 %v3277_v10, %v1650_v29  ;;  %v1661_v42 = vrot.slane %v1660_v30, 2  ;;  %v1574_v52 = vadd.f32 %v3259_v37, %v1362_v32 }
 0x191   :  { %v1854_v44 = vadd.f32 %v3277_v10, %v1643_v38  ;;  %v1654_v45 = vrot.slane %v1653_v40, 2  ;;  %v1572_v46 = vadd.f32 %v3259_v37, %v1354_v41 }
 0x192   :  { %2932 = vtanh.f32 %v1855_v33  ;;  %v1662_v48 = vmax.f32 %v1660_v30, %v1661_v42  ;;  %v1672_v49 = vmax.f32 %v1573_v43, %v1574_v52 }
 0x193   :  { %2934 = vtanh.f32 %v1854_v44  ;;  %v1655_v50 = vmax.f32 %v1653_v40, %v1654_v45  ;;  %v1665_v3 = vmax.f32 %v1571_v47, %v1572_v46  ;;  %v1085_v51 = vpop.f32.mrb[36].mxu0  ;;  %v2645_v53 = vpop.f32.mrb[36].mxu1 }
 0x194   :  { %v2929_v55 = vpop.eup %2928  ;;  %v1663_v56 = vrot.slane %v1662_v48, 1  ;;  %v1673_v59 = vrot.slane %v1672_v49, 4  ;;  %v1375_v60 = vadd.f32 %v2645_v53, %v1085_v51  ;;  %v1087_v31 = vpop.f32.mrb[37].mxu0 }
 0x195   :  { %v1366_v61 = vpop.f32.mrb[37].mxu1  ;;  %v2931_v57 = vpop.eup %2930  ;;  %v1917_v22 = vpack.c.bf16 %v2929_v55, %v2929_v55  ;;  %v1656_v63 = vrot.slane %v1655_v50, 1  ;;  %v1666_v0 = vrot.slane %v1665_v3, 4 }
 0x196   :  { %v1367_v39 = vadd.f32 %v1366_v61, %v1077_v8  ;;  %v1088_v1 = vpop.f32.mrb[38].mxu0  ;;  %v2646_v4 = vpop.f32.mrb[38].mxu1  ;;  %v1916_v7 = vpack.c.bf16 %v2931_v57, %v2931_v57  ;;  %v1664_v26 = vmax.f32 %v1662_v48, %v1663_v56  ;;  %v1674_v9 = vmax.f32 %v1672_v49, %v1673_v59 }
 0x197   :  { %v1090_v12 = vpop.f32.mrb[39].mxu0  ;;  %v1369_v13 = vpop.f32.mrb[39].mxu1  ;;  %v1986_v16 = vunpack.c.l.b16 %v1917_v22  ;;  %v1657_v17 = vmax.f32 %v1655_v50, %v1656_v63  ;;  %v1667_v20 = vmax.f32 %v1665_v3, %v1666_v0  ;;  %v1577_v14 = vadd.f32 %v3257_v34, %v1375_v60  ;;  %v2905_v63 = vld [vmem:[#allocation7 + $0xbc] sm:$0xff]  }
 0x198   :  { %v1985_v5 = vunpack.c.l.b16 %v1916_v7  ;;  %v1857_v24 = vadd.f32 %v3277_v10, %v1664_v26  ;;  %v1675_v25 = vrot.slane %v1674_v9, 2  ;;  %v1378_v18 = vadd.f32 %v2646_v4, %v1088_v1  ;;  %2697 = vmatprep.subr.bf16.mxu1 %v2905_v63 }
 0x199   :  { %v2017_v29 = vrot.slane %v1986_v16, 7  ;;  %v1856_v8 = vadd.f32 %v3277_v10, %v1657_v17  ;;  %v1668_v30 = vrot.slane %v1667_v20, 2  ;;  %v1370_v32 = vadd.f32 %v1369_v13, %v1080_v28  ;;  %2698 = vmatpush3.bf16.msra.mxu1 %v2905_v63 }
 0x19a   :  { %2936 = vtanh.f32 %v1857_v24  ;;  %v1676_v35 = vmax.f32 %v1674_v9, %v1675_v25  ;;  %v1575_v36 = vadd.f32 %v3257_v34, %v1367_v39  ;;  %v1578_v38 = vadd.f32 %v3259_v37, %v1378_v18 }
 0x19b   :  { %2938 = vtanh.f32 %v1856_v8  ;;  %v1669_v40 = vmax.f32 %v1667_v20, %v1668_v30  ;;  %v1576_v41 = vadd.f32 %v3259_v37, %v1370_v32  ;;  %v1093_v33 = vpop.f32.mrb[40].mxu0  ;;  %v2649_v42 = vpop.f32.mrb[40].mxu1  ;;  %v2019_v43 = vsel %vm2018_vm1, %v2017_v29, %v1985_v5 }
 0x19c   :  { %v2933_v52 = vpop.eup %2932  ;;  %v1677_v44 = vrot.slane %v1676_v35, 1  ;;  %v1686_v45 = vmax.f32 %v1577_v14, %v1578_v38  ;;  %v1095_v47 = vpop.f32.mrb[41].mxu0 }
 0x19d   :  { %v1382_v46 = vpop.f32.mrb[41].mxu1  ;;  %v2935_v28 = vpop.eup %2934  ;;  %v1919_v48 = vpack.c.bf16 %v2933_v52, %v2933_v52  ;;  %v1670_v49 = vrot.slane %v1669_v40, 1  ;;  %v1679_v50 = vmax.f32 %v1575_v36, %v1576_v41 }
 0x19e   :  { %v1383_v3 = vadd.f32 %v1382_v46, %v1093_v33  ;;  %v1096_v51 = vpop.f32.mrb[42].mxu0  ;;  %v2650_v53 = vpop.f32.mrb[42].mxu1  ;;  %v1918_v55 = vpack.c.bf16 %v2935_v28, %v2935_v28  ;;  %v1678_v56 = vmax.f32 %v1676_v35, %v1677_v44  ;;  %v1687_v59 = vrot.slane %v1686_v45, 4 }
 0x19f   :  { %v1098_v60 = vpop.f32.mrb[43].mxu0  ;;  %v1385_v31 = vpop.f32.mrb[43].mxu1  ;;  %v1988_v61 = vunpack.c.l.b16 %v1919_v48  ;;  %v1671_v57 = vmax.f32 %v1669_v40, %v1670_v49  ;;  %v1680_v22 = vrot.slane %v1679_v50, 4 }
 0x1a0   :  { %v1987_v0 = vunpack.c.l.b16 %v1918_v55  ;;  %v1859_v39 = vadd.f32 %v3277_v10, %v1678_v56  ;;  %v1688_v1 = vmax.f32 %v1686_v45, %v1687_v59  ;;  %v1386_v4 = vadd.f32 %v1385_v31, %v1096_v51  ;;  %v2906_v31 = vld [vmem:[#allocation7 + $0xc4] sm:$0xff]  }
 0x1a1   :  { %v1858_v7 = vadd.f32 %v3277_v10, %v1671_v57  ;;  %v1681_v26 = vmax.f32 %v1679_v50, %v1680_v22  ;;  %v1579_v9 = vadd.f32 %v3257_v34, %v1383_v3  ;;  %v2023_v17 = vrot.slane %v1988_v61, 5  ;;  %2699 = vmatprep.subr.bf16.mxu1 %v2906_v31 }
 0x1a2   :  { %v2020_v12 = vrot.slane %v1987_v0, 6  ;;  %2940 = vtanh.f32 %v1859_v39  ;;  %v1689_v13 = vrot.slane %v1688_v1, 2  ;;  %v1580_v16 = vadd.f32 %v3259_v37, %v1386_v4  ;;  %2700 = vmatpush3.bf16.msra.mxu1 %v2906_v31 }
 0x1a3   :  { %2942 = vtanh.f32 %v1858_v7  ;;  %v1682_v20 = vrot.slane %v1681_v26, 2  ;;  %v1101_v14 = vpop.f32.mrb[44].mxu0  ;;  %v3306_v5 = vpop.f32.mrb[44].mxu1 }
 0x1a4   :  { %v2937_v24 = vpop.eup %2936  ;;  %v1690_v25 = vmax.f32 %v1688_v1, %v1689_v13  ;;  %v1693_v18 = vmax.f32 %v1579_v9, %v1580_v16  ;;  %v1391_v29 = vadd.f32 %v2649_v42, %v1101_v14  ;;  %v1103_v8 = vpop.f32.mrb[45].mxu0  ;;  %v2022_v32 = vsel %vm2021_vm2, %v2020_v12, %v2019_v43 }
 0x1a5   :  { %v1398_v30 = vpop.f32.mrb[45].mxu1  ;;  %v2939_v35 = vpop.eup %2938  ;;  %v1683_v36 = vmax.f32 %v1681_v26, %v1682_v20  ;;  %v1921_v41 = vpack.c.bf16 %v2937_v24, %v2937_v24  ;;  %v2025_v33 = vsel %vm2024_vm3, %v2023_v17, %v2022_v32 }
 0x1a6   :  { %v1104_v38 = vpop.f32.mrb[46].mxu0  ;;  %v3309_v40 = vpop.f32.mrb[46].mxu1  ;;  %v1920_v52 = vpack.c.bf16 %v2939_v35, %v2939_v35  ;;  %v1691_v44 = vrot.slane %v1690_v25, 1  ;;  %v1694_v45 = vrot.slane %v1693_v18, 4  ;;  %v1581_v51 = vadd.f32 %v3257_v34, %v1391_v29 }
 0x1a7   :  { %v1106_v47 = vpop.f32.mrb[47].mxu0  ;;  %v1401_v46 = vpop.f32.mrb[47].mxu1  ;;  %v1684_v28 = vrot.slane %v1683_v36, 1  ;;  %v1394_v48 = vadd.f32 %v2650_v53, %v1104_v38  ;;  %v1990_v42 = vunpack.c.l.b16 %v1921_v41 }
 0x1a8   :  { %v1989_v49 = vunpack.c.l.b16 %v1920_v52  ;;  %v1692_v50 = vmax.f32 %v1690_v25, %v1691_v44  ;;  %v1695_v3 = vmax.f32 %v1693_v18, %v1694_v45 }
 0x1a9   :  { %v1685_v43 = vmax.f32 %v1683_v36, %v1684_v28  ;;  %v1582_v55 = vadd.f32 %v3259_v37, %v1394_v48  ;;  %v2029_v63 = vrot.slane %v1990_v42, 3 }
 0x1aa   :  { %v1861_v56 = vadd.f32 %v3277_v10, %v1692_v50  ;;  %v1696_v59 = vrot.slane %v1695_v3, 2  ;;  %v2026_v60 = vrot.slane %v1989_v49, 4 }
 0x1ab   :  { %v1860_v61 = vadd.f32 %v3277_v10, %v1685_v43  ;;  %v1700_v57 = vmax.f32 %v1581_v51, %v1582_v55  ;;  %v1109_v53 = vpop.f32.mrb[48].mxu0  ;;  %v3316_v22 = vpop.f32.mrb[48].mxu1 }
 0x1ac   :  { %v2941_v0 = vpop.eup %2940  ;;  %2944 = vtanh.f32 %v1861_v56  ;;  %v1697_v39 = vmax.f32 %v1695_v3, %v1696_v59  ;;  %v1399_v1 = vadd.f32 %v1398_v30, %v1109_v53  ;;  %v1111_v4 = vpop.f32.mrb[49].mxu0  ;;  %v2028_v26 = vsel %vm2027_vm4, %v2026_v60, %v2025_v33 }
 0x1ad   :  { %v3318_v7 = vpop.f32.mrb[49].mxu1  ;;  %v2943_v9 = vpop.eup %2942  ;;  %2946 = vtanh.f32 %v1860_v61  ;;  %v1701_v12 = vrot.slane %v1700_v57, 4  ;;  %v1923_v17 = vpack.c.bf16 %v2941_v0, %v2941_v0  ;;  %v2031_v20 = vsel %vm2030_vm5, %v2029_v63, %v2028_v26 }
 0x1ae   :  { %v1112_v13 = vpop.f32.mrb[50].mxu0  ;;  %v3321_v16 = vpop.f32.mrb[50].mxu1  ;;  %v1698_v14 = vrot.slane %v1697_v39, 1  ;;  %v1922_v29 = vpack.c.bf16 %v2943_v9, %v2943_v9  ;;  %v1583_v35 = vadd.f32 %v3257_v34, %v1399_v1 }
 0x1af   :  { %v1402_v24 = vadd.f32 %v1401_v46, %v1112_v13  ;;  %v1114_v25 = vpop.f32.mrb[51].mxu0  ;;  %v1417_v18 = vpop.f32.mrb[51].mxu1  ;;  %v1702_v8 = vmax.f32 %v1700_v57, %v1701_v12  ;;  %v1992_v30 = vunpack.c.l.b16 %v1923_v17 }
 0x1b0   :  { %v1699_v32 = vmax.f32 %v1697_v39, %v1698_v14  ;;  %v1991_v38 = vunpack.c.l.b16 %v1922_v29 }
 0x1b1   :  { %v1584_v36 = vadd.f32 %v3259_v37, %v1402_v24  ;;  %v1703_v41 = vrot.slane %v1702_v8, 2  ;;  %v2035_v28 = vrot.slane %v1992_v30, 1  ;;  %v2907_v24 = vld [vmem:[#allocation7 + $0xcc] sm:$0xff]  }
 0x1b2   :  { %v1862_v33 = vadd.f32 %v3277_v10, %v1699_v32  ;;  %v2032_v44 = vrot.slane %v1991_v38, 2  ;;  %2701 = vmatprep.subr.bf16.mxu1 %v2907_v24 }
 0x1b3   :  { %v1707_v52 = vmax.f32 %v1583_v35, %v1584_v36  ;;  %v1704_v45 = vmax.f32 %v1702_v8, %v1703_v41  ;;  %v1117_v47 = vpop.f32.mrb[52].mxu0  ;;  %v3327_v46 = vpop.f32.mrb[52].mxu1  ;;  %2702 = vmatpush3.bf16.msra.mxu1 %v2907_v24 }
 0x1b4   :  { %2948 = vtanh.f32 %v1862_v33  ;;  %v1407_v42 = vadd.f32 %v3306_v5, %v1117_v47  ;;  %v1119_v49 = vpop.f32.mrb[53].mxu0  ;;  %v3330_v50 = vpop.f32.mrb[53].mxu1  ;;  %v2034_v3 = vsel %vm2033_vm6, %v2032_v44, %v2031_v20 }
 0x1b5   :  { %v1708_v48 = vrot.slane %v1707_v52, 4  ;;  %v1705_v43 = vrot.slane %v1704_v45, 1  ;;  %v1120_v51 = vpop.f32.mrb[54].mxu0  ;;  %v3333_v55 = vpop.f32.mrb[54].mxu1  ;;  %v3336_v56 = vsel %vm2036_vm7, %v2035_v28, %v2034_v3 }
 0x1b6   :  { %v2945_v59 = vpop.eup %2944  ;;  %v1410_v31 = vadd.f32 %v3309_v40, %v1120_v51  ;;  %v1122_v61 = vpop.f32.mrb[55].mxu0  ;;  %v1585_v1 = vadd.f32 %v3257_v34, %v1407_v42 }
 0x1b7   :  { %v1709_v60 = vmax.f32 %v1707_v52, %v1708_v48  ;;  %v3339_v57 = vpop.f32.mrb[55].mxu1  ;;  %v2947_v5 = vpop.eup %2946  ;;  %v1925_v53 = vpack.c.bf16 %v2945_v59, %v2945_v59  ;;  %v1706_v63 = vmax.f32 %v1704_v45, %v1705_v43  ;;  %v2909_v61 = vld [vmem:[#allocation7 + $0xdc] sm:$0xff]  }
 0x1b8   :  { %v1924_v0 = vpack.c.bf16 %v2947_v5, %v2947_v5  ;;  %v1586_v4 = vadd.f32 %v3259_v37, %v1410_v31 }
 0x1b9   :  { %v1710_v39 = vrot.slane %v1709_v60, 2  ;;  %v1994_v26 = vunpack.c.l.b16 %v1925_v53  ;;  %v1863_v9 = vadd.f32 %v3277_v10, %v1706_v63 }
 0x1ba   :  { %v1993_v12 = vunpack.c.l.b16 %v1924_v0  ;;  %v1714_v17 = vmax.f32 %v1585_v1, %v1586_v4 }
 0x1bb   :  { %v1711_v13 = vmax.f32 %v1709_v60, %v1710_v39  ;;  %v2038_v20 = vrot.slane %v1994_v26, 7  ;;  %2950 = vtanh.f32 %v1863_v9  ;;  %v1125_v40 = vpop.f32.mrb[56].mxu0  ;;  %v3344_v14 = vpop.f32.mrb[56].mxu1 }
 0x1bc   :  { %v1715_v29 = vrot.slane %v1714_v17, 4  ;;  %v1415_v8 = vadd.f32 %v3318_v7, %v1125_v40  ;;  %v1127_v30 = vpop.f32.mrb[57].mxu0  ;;  %v3347_v32 = vpop.f32.mrb[57].mxu1 }
 0x1bd   :  { %v1712_v25 = vrot.slane %v1711_v13, 1  ;;  %v1128_v35 = vpop.f32.mrb[58].mxu0  ;;  %v3349_v36 = vpop.f32.mrb[58].mxu1  ;;  %v2039_v38 = vsel %vm2018_vm1, %v2038_v20, %v1993_v12 }
 0x1be   :  { %v2949_v41 = vpop.eup %2948  ;;  %v1716_v52 = vmax.f32 %v1714_v17, %v1715_v29  ;;  %v1418_v44 = vadd.f32 %v1417_v18, %v1128_v35  ;;  %v1130_v45 = vpop.f32.mrb[59].mxu0  ;;  %v1587_v42 = vadd.f32 %v3257_v34, %v1415_v8  ;;  %v2908_v18 = vld [vmem:[#allocation7 + $0xd4] sm:$0xff]  }
 0x1bf   :  { %v1713_v33 = vmax.f32 %v1711_v13, %v1712_v25  ;;  %v3352_v47 = vpop.f32.mrb[59].mxu1  ;;  %v1926_v28 = vpack.c.bf16 %v2949_v41, %v2949_v41  ;;  %2703 = vmatprep.subr.bf16.mxu1 %v2908_v18 }
 0x1c0   :  { %v1717_v48 = vrot.slane %v1716_v52, 2  ;;  %v1588_v49 = vadd.f32 %v3259_v37, %v1418_v44  ;;  %2704 = vmatpush3.bf16.msra.mxu1 %v2908_v18  ;;  %v2910_v44 = vld [vmem:[#allocation7 + $0x128] sm:$0xff]  }
 0x1c1   :  { %v1864_v7 = vadd.f32 %v3277_v10, %v1713_v33  ;;  %v1995_v3 = vunpack.c.l.b16 %v1926_v28  ;;  %2705 = vmatprep.subr.bf16.mxu1 %v2909_v61 }
 0x1c2   :  { %v1718_v43 = vmax.f32 %v1716_v52, %v1717_v48  ;;  %v1721_v51 = vmax.f32 %v1587_v42, %v1588_v49 }
 0x1c3   :  { %2952 = vtanh.f32 %v1864_v7  ;;  %v2040_v59 = vrot.slane %v1995_v3, 6  ;;  %v1133_v60 = vpop.f32.mrb[60].mxu0  ;;  %v3357_v31 = vpop.f32.mrb[60].mxu1 }
 0x1c4   :  { %v1719_v5 = vrot.slane %v1718_v43, 1  ;;  %v1722_v53 = vrot.slane %v1721_v51, 4  ;;  %v1423_v63 = vadd.f32 %v3316_v22, %v1133_v60  ;;  %v1135_v0 = vpop.f32.mrb[61].mxu0  ;;  %v3360_v39 = vpop.f32.mrb[61].mxu1  ;;  %2706 = vmatpush3.bf16.msra.mxu1 %v2909_v61 }
 0x1c5   :  { %v2951_v1 = vpop.eup %2950  ;;  %v1136_v4 = vpop.f32.mrb[62].mxu0  ;;  %v2041_v9 = vsel %vm2021_vm2, %v2040_v59, %v2039_v38  ;;  %2591 = vmatprep.subr.bf16.mxu1 %v2910_v44 }
 0x1c6   :  { %v3362_v26 = vpop.f32.mrb[62].mxu1  ;;  %v1927_v12 = vpack.c.bf16 %v2951_v1, %v2951_v1  ;;  %v1720_v13 = vmax.f32 %v1718_v43, %v1719_v5  ;;  %v1723_v17 = vmax.f32 %v1721_v51, %v1722_v53  ;;  %v1138_v20 = vpop.f32.mrb[63].mxu0  ;;  %v1426_v24 = vadd.f32 %v3321_v16, %v1136_v4 }
 0x1c7   :  { %v3365_v40 = vpop.f32.mrb[63].mxu1  ;;  %v1589_v8 = vadd.f32 %v3257_v34, %v1423_v63 }
 0x1c8   :  { %v1996_v22 = vunpack.c.l.b16 %v1927_v12  ;;  %v1865_v25 = vadd.f32 %v3277_v10, %v1720_v13  ;;  %v1724_v29 = vrot.slane %v1723_v17, 2  ;;  %v1590_v30 = vadd.f32 %v3259_v37, %v1426_v24 }
 0x1ca   :  { %v2042_v35 = vrot.slane %v1996_v22, 5  ;;  %2954 = vtanh.f32 %v1865_v25  ;;  %v1725_v38 = vmax.f32 %v1723_v17, %v1724_v29  ;;  %v1728_v41 = vmax.f32 %v1589_v8, %v1590_v30 }
 0x1cb   :  { %v1141_v33 = vpop.f32.mrb[64].mxu0  ;;  %v3371_v52 = vpop.f32.mrb[64].mxu1 }
 0x1cc   :  { %v1726_v16 = vrot.slane %v1725_v38, 1  ;;  %v1431_v28 = vadd.f32 %v3330_v50, %v1141_v33  ;;  %v1143_v7 = vpop.f32.mrb[65].mxu0  ;;  %v3374_v48 = vpop.f32.mrb[65].mxu1  ;;  %v2043_v42 = vsel %vm2024_vm3, %v2042_v35, %v2041_v9  ;;  %v1729_v3 = vrot.slane %v1728_v41, 4 }
 0x1cd   :  { %v2953_v45 = vpop.eup %2952  ;;  %v1144_v43 = vpop.f32.mrb[66].mxu0 }
 0x1ce   :  { %v1928_v49 = vpack.c.bf16 %v2953_v45, %v2953_v45  ;;  %v3377_v51 = vpop.f32.mrb[66].mxu1  ;;  %v1727_v59 = vmax.f32 %v1725_v38, %v1726_v16  ;;  %v1434_v60 = vadd.f32 %v3339_v57, %v1144_v43  ;;  %v1146_v18 = vpop.f32.mrb[67].mxu0  ;;  %v1730_v53 = vmax.f32 %v1728_v41, %v1729_v3 }
 0x1cf   :  { %v3380_v61 = vpop.f32.mrb[67].mxu1  ;;  %v1591_v63 = vadd.f32 %v3257_v34, %v1431_v28 }
 0x1d0   :  { %v1997_v5 = vunpack.c.l.b16 %v1928_v49  ;;  %v1866_v50 = vadd.f32 %v3277_v10, %v1727_v59  ;;  %v1592_v0 = vadd.f32 %v3259_v37, %v1434_v60  ;;  %v1731_v1 = vrot.slane %v1730_v53, 2 }
 0x1d2   :  { %v2044_v4 = vrot.slane %v1997_v5, 4  ;;  %2956 = vtanh.f32 %v1866_v50  ;;  %v1735_v9 = vmax.f32 %v1591_v63, %v1592_v0  ;;  %v1732_v12 = vmax.f32 %v1730_v53, %v1731_v1 }
 0x1d3   :  { %v1149_v13 = vpop.f32.mrb[68].mxu0  ;;  %v3385_v17 = vpop.f32.mrb[68].mxu1 }
 0x1d4   :  { %v2045_v57 = vsel %vm2027_vm4, %v2044_v4, %v2043_v42  ;;  %v2955_v20 = vpop.eup %2954  ;;  %v1736_v24 = vrot.slane %v1735_v9, 4  ;;  %v1439_v22 = vadd.f32 %v3327_v46, %v1149_v13  ;;  %v1151_v25 = vpop.f32.mrb[69].mxu0  ;;  %v1733_v8 = vrot.slane %v1732_v12, 1 }
 0x1d5   :  { %v3389_v29 = vpop.f32.mrb[69].mxu1  ;;  %v1152_v30 = vpop.f32.mrb[70].mxu0  ;;  %v1929_v38 = vpack.c.bf16 %v2955_v20, %v2955_v20 }
 0x1d6   :  { %v3391_v35 = vpop.f32.mrb[70].mxu1  ;;  %v1737_v41 = vmax.f32 %v1735_v9, %v1736_v24  ;;  %v1442_v33 = vadd.f32 %v3333_v55, %v1152_v30  ;;  %v1154_v44 = vpop.f32.mrb[71].mxu0  ;;  %v1734_v16 = vmax.f32 %v1732_v12, %v1733_v8  ;;  %v1593_v42 = vadd.f32 %v3257_v34, %v1439_v22 }
 0x1d7   :  { %v3394_v45 = vpop.f32.mrb[71].mxu1  ;;  %v1998_v28 = vunpack.c.l.b16 %v1929_v38 }
 0x1d8   :  { %v1738_v7 = vrot.slane %v1737_v41, 2  ;;  %v1594_v46 = vadd.f32 %v3259_v37, %v1442_v33  ;;  %v1867_v59 = vadd.f32 %v3277_v10, %v1734_v16 }
 0x1d9   :  { %v2046_v49 = vrot.slane %v1998_v28, 3 }
 0x1da   :  { %v1739_v3 = vmax.f32 %v1737_v41, %v1738_v7  ;;  %v1742_v43 = vmax.f32 %v1593_v42, %v1594_v46  ;;  %2958 = vtanh.f32 %v1867_v59 }
 0x1db   :  { %v1157_v60 = vpop.f32.mrb[72].mxu0  ;;  %v2681_v18 = vpop.f32.mrb[72].mxu1  ;;  %v2047_v5 = vsel %vm2030_vm5, %v2046_v49, %v2045_v57 }
 0x1dc   :  { %v2957_v55 = vpop.eup %2956  ;;  %v1740_v53 = vrot.slane %v1739_v3, 1  ;;  %v1743_v50 = vrot.slane %v1742_v43, 4  ;;  %v1447_v63 = vadd.f32 %v3347_v32, %v1157_v60  ;;  %v1519_v0 = vadd.f32 %v2681_v18, %v3231_v54  ;;  %v1159_v1 = vpop.f32.mrb[73].mxu0 }
 0x1dd   :  { %v3402_v4 = vpop.f32.mrb[73].mxu1  ;;  %v1160_v9 = vpop.f32.mrb[74].mxu0  ;;  %v1930_v13 = vpack.c.bf16 %v2957_v55, %v2957_v55 }
 0x1de   :  { %v2682_v12 = vpop.f32.mrb[74].mxu1  ;;  %v1744_v20 = vmax.f32 %v1742_v43, %v1743_v50  ;;  %v1162_v24 = vpop.f32.mrb[75].mxu0  ;;  %v1741_v25 = vmax.f32 %v1739_v3, %v1740_v53  ;;  %v1450_v57 = vadd.f32 %v3352_v47, %v1160_v9  ;;  %v1595_v54 = vadd.f32 %v3257_v34, %v1447_v63 }
 0x1df   :  { %v3404_v22 = vpop.f32.mrb[75].mxu1  ;;  %v1522_v8 = vadd.f32 %v2682_v12, %v3233_v58  ;;  %v1999_v30 = vunpack.c.l.b16 %v1930_v13  ;;  %v1613_v38 = vadd.f32 %v3257_v34, %v1519_v0 }
 0x1e0   :  { %v1745_v32 = vrot.slane %v1744_v20, 2  ;;  %v1596_v41 = vadd.f32 %v3259_v37, %v1450_v57  ;;  %v1868_v28 = vadd.f32 %v3277_v10, %v1741_v25 }
 0x1e1   :  { %v1614_v33 = vadd.f32 %v3259_v37, %v1522_v8  ;;  %v2048_v44 = vrot.slane %v1999_v30, 2 }
 0x1e2   :  { %v1746_v16 = vmax.f32 %v1744_v20, %v1745_v32  ;;  %v1749_v7 = vmax.f32 %v1595_v54, %v1596_v41  ;;  %2960 = vtanh.f32 %v1868_v28 }
 0x1e3   :  { %v3413_v42 = vmax.f32 %v1613_v38, %v1614_v33  ;;  %v1165_v47 = vpop.f32.mrb[76].mxu0  ;;  %v2685_v58 = vpop.f32.mrb[76].mxu1  ;;  %v3416_v46 = vsel %vm2033_vm6, %v2048_v44, %v2047_v5 }
 0x1e4   :  { %v1747_v49 = vrot.slane %v1746_v16, 1  ;;  %v1455_v3 = vadd.f32 %v3344_v14, %v1165_v47  ;;  %v1535_v43 = vadd.f32 %v2685_v58, %v3239_v6  ;;  %v1167_v59 = vpop.f32.mrb[77].mxu0  ;;  %v1526_v60 = vpop.f32.mrb[77].mxu1  ;;  %v1750_v18 = vrot.slane %v1749_v7, 4 }
 0x1e5   :  { %v1527_v55 = vadd.f32 %v1526_v60, %v3235_v62  ;;  %v1168_v53 = vpop.f32.mrb[78].mxu0  ;;  %v2686_v50 = vpop.f32.mrb[78].mxu1 }
 0x1e6   :  { %v1748_v63 = vmax.f32 %v1746_v16, %v1747_v49  ;;  %v1458_v0 = vadd.f32 %v3349_v36, %v1168_v53  ;;  %v1170_v1 = vpop.f32.mrb[79].mxu0  ;;  %v1529_v9 = vpop.f32.mrb[79].mxu1  ;;  %v1751_v5 = vmax.f32 %v1749_v7, %v1750_v18  ;;  %v1538_v12 = vadd.f32 %v2686_v50, %v3243_v11 }
 0x1e7   :  { %v1597_v6 = vadd.f32 %v3257_v34, %v1455_v3  ;;  %v1530_v20 = vadd.f32 %v1529_v9, %v3237_v2  ;;  %v1617_v24 = vadd.f32 %v3257_v34, %v1535_v43  ;;  %v2959_v36 = vpop.eup %2958  ;;  %v1615_v57 = vadd.f32 %v3257_v34, %v1527_v55 }
 0x1e8   :  { %v1869_v14 = vadd.f32 %v3277_v10, %v1748_v63  ;;  %v1598_v13 = vadd.f32 %v3259_v37, %v1458_v0  ;;  %v1752_v62 = vrot.slane %v1751_v5, 2  ;;  %v1618_v25 = vadd.f32 %v3259_v37, %v1538_v12 }
 0x1e9   :  { %v1616_v11 = vadd.f32 %v3259_v37, %v1530_v20  ;;  %v1931_v59 = vpack.c.bf16 %v2959_v36, %v2959_v36 }
 0x1ea   :  { %2962 = vtanh.f32 %v1869_v14  ;;  %v1756_v8 = vmax.f32 %v1597_v6, %v1598_v13  ;;  %v1753_v30 = vmax.f32 %v1751_v5, %v1752_v62  ;;  %v3431_v32 = vmax.f32 %v1617_v24, %v1618_v25 }
 0x1eb   :  { %v1173_v54 = vpop.f32.mrb[80].mxu0  ;;  %v2689_v38 = vpop.f32.mrb[80].mxu1  ;;  %v3433_v33 = vmax.f32 %v1615_v57, %v1616_v11  ;;  %v2000_v9 = vunpack.c.l.b16 %v1931_v59 }
 0x1ec   :  { %v1757_v41 = vrot.slane %v1756_v8, 4  ;;  %v1463_v2 = vadd.f32 %v3360_v39, %v1173_v54  ;;  %v1551_v44 = vadd.f32 %v2689_v38, %v3251_v23  ;;  %v1175_v16 = vpop.f32.mrb[81].mxu0  ;;  %v1542_v28 = vpop.f32.mrb[81].mxu1  ;;  %v1754_v7 = vrot.slane %v1753_v30, 1 }
 0x1ed   :  { %v1176_v47 = vpop.f32.mrb[82].mxu0  ;;  %v2690_v58 = vpop.f32.mrb[82].mxu1  ;;  %v1543_v55 = vadd.f32 %v1542_v28, %v3245_v15 }
 0x1ee   :  { %v1758_v49 = vmax.f32 %v1756_v8, %v1757_v41  ;;  %v1178_v3 = vpop.f32.mrb[83].mxu0  ;;  %v1545_v43 = vpop.f32.mrb[83].mxu1  ;;  %v1755_v60 = vmax.f32 %v1753_v30, %v1754_v7  ;;  %v1466_v53 = vadd.f32 %v3365_v40, %v1176_v47  ;;  %v1554_v23 = vadd.f32 %v2690_v58, %v3255_v27 }
 0x1ef   :  { %v2961_v50 = vpop.eup %2960  ;;  %v1599_v0 = vadd.f32 %v3257_v34, %v1463_v2  ;;  %v1621_v5 = vadd.f32 %v3257_v34, %v1551_v44  ;;  %v1546_v15 = vadd.f32 %v1545_v43, %v3247_v19  ;;  %v1619_v24 = vadd.f32 %v3257_v34, %v1543_v55 }
 0x1f0   :  { %v1759_v18 = vrot.slane %v1758_v49, 2  ;;  %v1870_v39 = vadd.f32 %v3277_v10, %v1755_v60  ;;  %v1600_v1 = vadd.f32 %v3259_v37, %v1466_v53  ;;  %v1622_v12 = vadd.f32 %v3259_v37, %v1554_v23 }
 0x1f1   :  { %v1932_v6 = vpack.c.bf16 %v2961_v50, %v2961_v50  ;;  %v1620_v36 = vadd.f32 %v3259_v37, %v1546_v15  ;;  %v2050_v30 = vrot.slane %v2000_v9, 1 }
 0x1f2   :  { %v1760_v63 = vmax.f32 %v1758_v49, %v1759_v18  ;;  %2964 = vtanh.f32 %v1870_v39  ;;  %v1763_v20 = vmax.f32 %v1599_v0, %v1600_v1  ;;  %v3447_v25 = vmax.f32 %v1621_v5, %v1622_v12 }
 0x1f3   :  { %v1181_v14 = vpop.f32.mrb[84].mxu0  ;;  %v3450_v19 = vmax.f32 %v1619_v24, %v1620_v36  ;;  %v2051_v44 = vsel %vm2036_vm7, %v2050_v30, %v3416_v46  ;;  %v2001_v16 = vunpack.c.l.b16 %v1932_v6 }
 0x1f4   :  { %v2963_v40 = vpop.eup %2962  ;;  %v1761_v13 = vrot.slane %v1760_v63, 1  ;;  %v1183_v62 = vpop.f32.mrb[85].mxu0  ;;  %v1764_v11 = vrot.slane %v1763_v20, 4  ;;  %v2080_v47 = vpack.c.b16 %v2051_v44, %v3336_v56  ;;  %v1471_v43 = vadd.f32 %v3357_v31, %v1181_v14 }
 0x1f5   :  { %v1933_v27 = vpack.c.bf16 %v2963_v40, %v2963_v40  ;;  %v1184_v57 = vpop.f32.mrb[86].mxu0 }
 0x1f6   :  { %v1762_v8 = vmax.f32 %v1760_v63, %v1761_v13  ;;  %v1186_v54 = vpop.f32.mrb[87].mxu0  ;;  %v1765_v2 = vmax.f32 %v1763_v20, %v1764_v11  ;;  %2707 = vmatprep.mubr.bf16.mxu1 %v2080_v47  ;;  %v1474_v59 = vadd.f32 %v3362_v26, %v1184_v57  ;;  %v1601_v39 = vadd.f32 %v3257_v34, %v1471_v43 }
 0x1f7   :  { %v2002_v38 = vunpack.c.l.b16 %v1933_v27 }
 0x1f8   :  { %v1871_v41 = vadd.f32 %v3277_v10, %v1762_v8  ;;  %v1766_v7 = vrot.slane %v1765_v2, 2  ;;  %v1602_v56 = vadd.f32 %v3259_v37, %v1474_v59 }
 0x1f9   :  { %v2052_v28 = vrot.slane %v2002_v38, 7 }
 0x1fa   :  { %2966 = vtanh.f32 %v1871_v41  ;;  %v1767_v3 = vmax.f32 %v1765_v2, %v1766_v7  ;;  %v1770_v1 = vmax.f32 %v1601_v39, %v1602_v56 }
 0x1fb   :  { %v2053_v58 = vsel %vm2018_vm1, %v2052_v28, %v2001_v16  ;;  %v1189_v49 = vpop.f32.mrb[88].mxu0 }
 0x1fc   :  { %v1191_v60 = vpop.f32.mrb[89].mxu0  ;;  %v2965_v18 = vpop.eup %2964  ;;  %v1479_v55 = vadd.f32 %v3374_v48, %v1189_v49  ;;  %v1768_v50 = vrot.slane %v1767_v3, 1  ;;  %v1771_v12 = vrot.slane %v1770_v1, 4 }
 0x1fd   :  { %v1192_v46 = vpop.f32.mrb[90].mxu0  ;;  %v1934_v53 = vpack.c.bf16 %v2965_v18, %v2965_v18 }
 0x1fe   :  { %v1194_v23 = vpop.f32.mrb[91].mxu0  ;;  %v1769_v0 = vmax.f32 %v1767_v3, %v1768_v50  ;;  %v1482_v9 = vadd.f32 %v3380_v61, %v1192_v46  ;;  %v1603_v31 = vadd.f32 %v3257_v34, %v1479_v55  ;;  %v1772_v40 = vmax.f32 %v1770_v1, %v1771_v12 }
 0x1ff   :  { %v2003_v63 = vunpack.c.l.b16 %v1934_v53  ;;  %v1813_v53 = vrot.slane %v3413_v42, 4  ;;  %v1820_v1 = vrot.slane %v3433_v33, 4 }
 0x200   :  { %v1872_v5 = vadd.f32 %v3277_v10, %v1769_v0  ;;  %v1604_v48 = vadd.f32 %v3259_v37, %v1482_v9  ;;  %v1773_v24 = vrot.slane %v1772_v40, 2 }
 0x201   :  { %v2054_v26 = vrot.slane %v2003_v63, 6 }
 0x202   :  { %2968 = vtanh.f32 %v1872_v5  ;;  %v1777_v6 = vmax.f32 %v1603_v31, %v1604_v48  ;;  %v1774_v30 = vmax.f32 %v1772_v40, %v1773_v24  ;;  %v1834_v5 = vrot.slane %v3450_v19, 4 }
 0x203   :  { %v1197_v15 = vpop.f32.mrb[92].mxu0  ;;  %v2055_v61 = vsel %vm2021_vm2, %v2054_v26, %v2053_v58 }
 0x204   :  { %v2967_v14 = vpop.eup %2966  ;;  %v1487_v13 = vadd.f32 %v3371_v52, %v1197_v15  ;;  %v1199_v20 = vpop.f32.mrb[93].mxu0  ;;  %v1778_v36 = vrot.slane %v1777_v6, 4  ;;  %v1775_v44 = vrot.slane %v1774_v30, 1  ;;  %v1814_v15 = vmax.f32 %v3413_v42, %v1813_v53 }
 0x205   :  { %v1935_v62 = vpack.c.bf16 %v2967_v14, %v2967_v14  ;;  %v1200_v27 = vpop.f32.mrb[94].mxu0  ;;  %v1835_v42 = vmax.f32 %v3450_v19, %v1834_v5 }
 0x206   :  { %v1202_v57 = vpop.f32.mrb[95].mxu0  ;;  %v1490_v11 = vadd.f32 %v3377_v51, %v1200_v27  ;;  %v1779_v54 = vmax.f32 %v1777_v6, %v1778_v36  ;;  %v1605_v41 = vadd.f32 %v3257_v34, %v1487_v13  ;;  %v1776_v47 = vmax.f32 %v1774_v30, %v1775_v44 }
 0x207   :  { %v2004_v8 = vunpack.c.l.b16 %v1935_v62  ;;  %v1841_v6 = vrot.slane %v3447_v25, 4 }
 0x208   :  { %v1606_v2 = vadd.f32 %v3259_v37, %v1490_v11  ;;  %v1780_v52 = vrot.slane %v1779_v54, 2  ;;  %v1873_v60 = vadd.f32 %v3277_v10, %v1776_v47 }
 0x209   :  { %v2056_v38 = vrot.slane %v2004_v8, 5 }
 0x20a   :  { %v1784_v16 = vmax.f32 %v1605_v41, %v1606_v2  ;;  %v1781_v58 = vmax.f32 %v1779_v54, %v1780_v52  ;;  %2970 = vtanh.f32 %v1873_v60  ;;  %v1842_v41 = vmax.f32 %v3447_v25, %v1841_v6 }
 0x20b   :  { %v1205_v28 = vpop.f32.mrb[96].mxu0  ;;  %v2057_v7 = vsel %vm2024_vm3, %v2056_v38, %v2055_v61  ;;  %v1821_v61 = vmax.f32 %v3433_v33, %v1820_v1 }
 0x20c   :  { %v1495_v49 = vadd.f32 %v3389_v29, %v1205_v28  ;;  %v1207_v3 = vpop.f32.mrb[97].mxu0  ;;  %v1785_v43 = vrot.slane %v1784_v16, 4  ;;  %v2969_v59 = vpop.eup %2968  ;;  %v1782_v18 = vrot.slane %v1781_v58, 1  ;;  %v1836_v28 = vrot.slane %v1835_v42, 2 }
 0x20d   :  { %v1208_v51 = vpop.f32.mrb[98].mxu0  ;;  %v1936_v50 = vpack.c.bf16 %v2969_v59, %v2969_v59  ;;  %v1822_v44 = vrot.slane %v1821_v61, 2 }
 0x20e   :  { %v1498_v55 = vadd.f32 %v3394_v45, %v1208_v51  ;;  %v1210_v46 = vpop.f32.mrb[99].mxu0  ;;  %v1786_v39 = vmax.f32 %v1784_v16, %v1785_v43  ;;  %v1783_v56 = vmax.f32 %v1781_v58, %v1782_v18  ;;  %v1607_v23 = vadd.f32 %v3257_v34, %v1495_v49 }
 0x20f   :  { %v2005_v63 = vunpack.c.l.b16 %v1936_v50  ;;  %v1827_v45 = vrot.slane %v3431_v32, 4  ;;  %v1843_v43 = vrot.slane %v1842_v41, 2  ;;  %v1823_v60 = vmax.f32 %v1821_v61, %v1822_v44 }
 0x210   :  { %v1608_v29 = vadd.f32 %v3259_v37, %v1498_v55  ;;  %v1787_v0 = vrot.slane %v1786_v39, 2  ;;  %v1874_v9 = vadd.f32 %v3277_v10, %v1783_v56  ;;  %v1837_v50 = vmax.f32 %v1835_v42, %v1836_v28 }
 0x211   :  { %v2058_v26 = vrot.slane %v2005_v63, 4  ;;  %v1828_v8 = vmax.f32 %v3431_v32, %v1827_v45  ;;  %v1844_v1 = vmax.f32 %v1842_v41, %v1843_v43  ;;  %v1824_v45 = vrot.slane %v1823_v60, 1 }
 0x212   :  { %v1791_v31 = vmax.f32 %v1607_v23, %v1608_v29  ;;  %v1788_v12 = vmax.f32 %v1786_v39, %v1787_v0  ;;  %2972 = vtanh.f32 %v1874_v9 }
 0x213   :  { %v1213_v48 = vpop.f32.mrb[100].mxu0  ;;  %v2059_v27 = vsel %vm2027_vm4, %v2058_v26, %v2057_v7  ;;  %v1829_v16 = vrot.slane %v1828_v8, 2 }
 0x214   :  { %v1792_v14 = vrot.slane %v1791_v31, 4  ;;  %v1215_v40 = vpop.f32.mrb[101].mxu0  ;;  %v1789_v13 = vrot.slane %v1788_v12, 1  ;;  %v1503_v20 = vadd.f32 %v3385_v17, %v1213_v48  ;;  %v1815_v17 = vrot.slane %v1814_v15, 2  ;;  %v2971_v33 = vpop.eup %2970 }
 0x215   :  { %v1216_v62 = vpop.f32.mrb[102].mxu0  ;;  %v1937_v32 = vpack.c.bf16 %v2971_v33, %v2971_v33  ;;  %v1830_v53 = vmax.f32 %v1828_v8, %v1829_v16 }
 0x216   :  { %v1793_v24 = vmax.f32 %v1791_v31, %v1792_v14  ;;  %v1506_v36 = vadd.f32 %v3391_v35, %v1216_v62  ;;  %v1218_v57 = vpop.f32.mrb[103].mxu0  ;;  %v1790_v11 = vmax.f32 %v1788_v12, %v1789_v13  ;;  %v1609_v54 = vadd.f32 %v3257_v34, %v1503_v20 }
 0x217   :  { %v1816_v3 = vmax.f32 %v1814_v15, %v1815_v17  ;;  %v2006_v51 = vunpack.c.l.b16 %v1937_v32  ;;  %v1838_v12 = vrot.slane %v1837_v50, 1  ;;  %v1825_v20 = vmax.f32 %v1823_v60, %v1824_v45 }
 0x218   :  { %v1794_v30 = vrot.slane %v1793_v24, 2  ;;  %v1610_v38 = vadd.f32 %v3259_v37, %v1506_v36  ;;  %v1875_v2 = vadd.f32 %v3277_v10, %v1790_v11 }
 0x219   :  { %v2060_v39 = vrot.slane %v2006_v51, 3  ;;  %v1817_v0 = vrot.slane %v1816_v3, 1  ;;  %v1839_v36 = vmax.f32 %v1837_v50, %v1838_v12 }
 0x21a   :  { %v1795_v52 = vmax.f32 %v1793_v24, %v1794_v30  ;;  %v1798_v35 = vmax.f32 %v1609_v54, %v1610_v38  ;;  %2974 = vtanh.f32 %v1875_v2  ;;  %v1880_v54 = vadd.f32 %v3277_v10, %v1825_v20  ;;  %v2914_v20 = vld [vmem:[#allocation7 + $0x138] sm:$0xff]  }
 0x21b   :  { %v1221_v19 = vpop.f32.mrb[104].mxu0  ;;  %v2061_v31 = vsel %vm2030_vm5, %v2060_v39, %v2059_v27  ;;  %v1818_v13 = vmax.f32 %v1816_v3, %v1817_v0  ;;  %v1882_v2 = vadd.f32 %v3277_v10, %v1839_v36  ;;  %v2919_v36 = vld [vmem:[#allocation7 + $0x108] sm:$0xff]  }
 0x21c   :  { %v1796_v7 = vrot.slane %v1795_v52, 1  ;;  %v1799_v47 = vrot.slane %v1798_v35, 4  ;;  %v1511_v58 = vadd.f32 %v3402_v4, %v1221_v19  ;;  %v1223_v49 = vpop.f32.mrb[105].mxu0  ;;  %v2973_v59 = vpop.eup %2972 }
 0x21d   :  { %v1224_v25 = vpop.f32.mrb[106].mxu0  ;;  %v1938_v56 = vpack.c.bf16 %v2973_v59, %v2973_v59  ;;  %v1879_v11 = vadd.f32 %v3277_v10, %v1818_v13 }
 0x21e   :  { %v1800_v18 = vmax.f32 %v1798_v35, %v1799_v47  ;;  %v1514_v55 = vadd.f32 %v3404_v22, %v1224_v25  ;;  %v1226_v46 = vpop.f32.mrb[107].mxu0  ;;  %v1797_v23 = vmax.f32 %v1795_v52, %v1796_v7  ;;  %v1611_v63 = vadd.f32 %v3257_v34, %v1511_v58 }
 0x21f   :  { %v2007_v9 = vunpack.c.l.b16 %v1938_v56  ;;  %v1831_v22 = vrot.slane %v1830_v53, 1  ;;  %v1845_v34 = vrot.slane %v1844_v1, 1 }
 0x220   :  { %v1801_v29 = vrot.slane %v1800_v18, 2  ;;  %v1612_v4 = vadd.f32 %v3259_v37, %v1514_v55  ;;  %v1876_v15 = vadd.f32 %v3277_v10, %v1797_v23 }
 0x221   :  { %v2062_v48 = vrot.slane %v2007_v9, 2  ;;  %v1832_v27 = vmax.f32 %v1830_v53, %v1831_v22  ;;  %v1846_v30 = vmax.f32 %v1844_v1, %v1845_v34  ;;  %v2912_v34 = vld [vmem:[#allocation7 + $0x130] sm:$0xff]  }
 0x222   :  { %v1802_v26 = vmax.f32 %v1800_v18, %v1801_v29  ;;  %v1805_v5 = vmax.f32 %v1611_v63, %v1612_v4  ;;  %2976 = vtanh.f32 %v1876_v15 }
 0x223   :  { %v2063_v37 = vsel %vm2033_vm6, %v2062_v48, %v2061_v31  ;;  %v1881_v41 = vadd.f32 %v3277_v10, %v1832_v27  ;;  %v1883_v52 = vadd.f32 %v3277_v10, %v1846_v30  ;;  %v2918_v27 = vld [vmem:[#allocation7 + $0x148] sm:$0xff]   ;;  %v2924_v30 = vld [vmem:[#allocation7 + $0x160] sm:$0xff]  }
 0x224   :  { %v1803_v14 = vrot.slane %v1802_v26, 1  ;;  %v1806_v40 = vrot.slane %v1805_v5, 4  ;;  %v2975_v6 = vpop.eup %2974 }
 0x225   :  { %v1939_v62 = vpack.c.bf16 %v2975_v6, %v2975_v6  ;;  %v2911_v6 = vld [vmem:[#allocation7 + $0xe8] sm:$0xff]  }
 0x226   :  { %v1804_v61 = vmax.f32 %v1802_v26, %v1803_v14  ;;  %v1807_v24 = vmax.f32 %v1805_v5, %v1806_v40 }
 0x227   :  { %v2008_v57 = vunpack.c.l.b16 %v1939_v62  ;;  %v2915_v62 = vld [vmem:[#allocation7 + $0xf8] sm:$0xff]  }
 0x228   :  { %v1877_v8 = vadd.f32 %v3277_v10, %v1804_v61  ;;  %v1808_v42 = vrot.slane %v1807_v24, 2  ;;  %v2916_v61 = vld [vmem:[#allocation7 + $0x140] sm:$0xff]  }
 0x229   :  { %v2064_v38 = vrot.slane %v2008_v57, 1  ;;  %v2920_v57 = vld [vmem:[#allocation7 + $0x150] sm:$0xff]  }
 0x22a   :  { %2978 = vtanh.f32 %v1877_v8  ;;  %v1809_v17 = vmax.f32 %v1807_v24, %v1808_v42  ;;  %v2917_v24 = vld [vmem:[#allocation7 + $0x100] sm:$0xff]   ;;  %v2921_v8 = vld [vmem:[#allocation7 + $0x110] sm:$0xff]   ;;  %v2922_v42 = vld [vmem:[#allocation7 + $0x158] sm:$0xff]  }
 0x22b   :  { %v2065_v44 = vsel %vm2036_vm7, %v2064_v38, %v2063_v37  ;;  %2980 = vtanh.f32 %v1879_v11  ;;  %v2913_v37 = vld [vmem:[#allocation7 + $0xf0] sm:$0xff]   ;;  %v2923_v11 = vld [vmem:[#allocation7 + $0x118] sm:$0xff]   ;;  %v114_v38 = vld [vmem:[#allocation7 + $0xe4] sm:$0x1] }
 0x22c   :  { %v1810_v33 = vrot.slane %v1809_v17, 1  ;;  %2982 = vtanh.f32 %v1880_v54  ;;  %v2977_v28 = vpop.eup %2976  ;;  %v2925_v54 = vld [vmem:[#allocation7 + $0x120] sm:$0xff]  }
 0x22d   :  { %2984 = vtanh.f32 %v1881_v41  ;;  %v1940_v19 = vpack.c.bf16 %v2977_v28, %v2977_v28 }
 0x22e   :  { %v1811_v35 = vmax.f32 %v1809_v17, %v1810_v33  ;;  %2986 = vtanh.f32 %v1882_v2  ;;  %v1948_v17 = vunpack.c.l.bf16 %v114_v38 }
 0x22f   :  { %2988 = vtanh.f32 %v1883_v52  ;;  %v2009_v43 = vunpack.c.l.b16 %v1940_v19 }
 0x230   :  { %v1878_v16 = vadd.f32 %v3277_v10, %v1811_v35  ;;  %v1952_v41 = vrot.slane %v1948_v17, %v3270_v21 }
 0x232   :  { %2990 = vtanh.f32 %v1878_v16 }
 0x234   :  { %v2979_v32 = vpop.eup %2978 }
 0x235   :  { %v1941_v7 = vpack.c.bf16 %v2979_v32, %v2979_v32  ;;  %v2981_v47 = vpop.eup %2980 }
 0x236   :  { %v2983_v49 = vpop.eup %2982  ;;  %v1943_v59 = vpack.c.bf16 %v2981_v47, %v2981_v47 }
 0x237   :  { %v2010_v58 = vunpack.c.l.b16 %v1941_v7  ;;  %v2985_v3 = vpop.eup %2984  ;;  %v1944_v18 = vpack.c.bf16 %v2983_v49, %v2983_v49  ;;  %v2926_v49 = vld [vmem:[#allocation5] sm:$0xff]  }
 0x238   :  { %v2987_v25 = vpop.eup %2986  ;;  %v1945_v10 = vpack.c.bf16 %v2985_v3, %v2985_v3  ;;  %v2012_v39 = vunpack.c.l.b16 %v1943_v59 }
 0x239   :  { %v2066_v51 = vrot.slane %v2010_v58, 7  ;;  %v2989_v60 = vpop.eup %2988  ;;  %v1946_v53 = vpack.c.bf16 %v2987_v25, %v2987_v25  ;;  %v2013_v23 = vunpack.c.l.b16 %v1944_v18  ;;  %v147_v25 = vld [vmem:[#allocation7 + $0x168] sm:$0x1] }
 0x23a   :  { %v1947_v56 = vpack.c.bf16 %v2989_v60, %v2989_v60  ;;  %v2014_v63 = vunpack.c.l.b16 %v1945_v10  ;;  %v2070_v1 = vrot.slane %v2012_v39, 5  ;;  %v2199_v59 = vunpack.c.l.bf16 %v147_v25 }
 0x23b   :  { %v2067_v55 = vsel %vm2018_vm1, %v2066_v51, %v2009_v43  ;;  %v2015_v4 = vunpack.c.l.b16 %v1946_v53  ;;  %v2072_v31 = vrot.slane %v2013_v23, 4  ;;  %v2927_v51 = vld [vmem:[#allocation5 + $0x8] sm:$0xff]  }
 0x23c   :  { %v2991_v46 = vpop.eup %2990  ;;  %v2016_v9 = vunpack.c.l.b16 %v1947_v56  ;;  %v2074_v26 = vrot.slane %v2014_v63, 3  ;;  %v2203_v18 = vrot.slane %v2199_v59, %v3270_v21 }
 0x23d   :  { %v1942_v50 = vpack.c.bf16 %v2991_v46, %v2991_v46  ;;  %v2076_v22 = vrot.slane %v2015_v4, 2 }
 0x23e   :  { %v2078_v48 = vrot.slane %v2016_v9, 1 }
 0x23f   :  { %v2011_v29 = vunpack.c.l.b16 %v1942_v50 }
 0x241   :  { %v2068_v0 = vrot.slane %v2011_v29, 6 }
 0x243   :  { %v2069_v45 = vsel %vm2021_vm2, %v2068_v0, %v2067_v55 }
 0x244   :  { %v2071_v5 = vsel %vm2024_vm3, %v2070_v1, %v2069_v45 }
 0x245   :  { %v2073_v12 = vsel %vm2027_vm4, %v2072_v31, %v2071_v5 }
 0x246   :  { %v2075_v15 = vsel %vm2030_vm5, %v2074_v26, %v2073_v12 }
 0x247   :  { %v2077_v14 = vsel %vm2033_vm6, %v2076_v22, %v2075_v15 }
 0x248   :  { %v2079_v40 = vsel %vm2036_vm7, %v2078_v48, %v2077_v14 }
 0x249   :  { %v2081_v13 = vpack.c.b16 %v2079_v40, %v2065_v44 }
 0x24b   :  { %2708 = vmatmul.mubr.bf16.vlgmr.msra.gmra.mrb[84].mxu1 %v2081_v13 }
 0x24c   :  { %2592 = vmatpush3.bf16.msra.mxu1 %v2911_v6 }
 0x24d   :  { %2593 = vmatprep.subr.bf16.mxu1 %v2912_v34 }
 0x250   :  { %2594 = vmatpush3.bf16.msra.mxu1 %v2913_v37 }
 0x251   :  { %2595 = vmatprep.subr.bf16.mxu1 %v2914_v20 }
 0x254   :  { %2596 = vmatpush3.bf16.msra.mxu1 %v2915_v62 }
 0x255   :  { %2597 = vmatprep.subr.bf16.mxu1 %v2916_v61 }
 0x258   :  { %2598 = vmatpush3.bf16.msra.mxu1 %v2917_v24 }
 0x259   :  { %2599 = vmatprep.subr.bf16.mxu1 %v2918_v27 }
 0x25c   :  { %2600 = vmatpush3.bf16.msra.mxu1 %v2919_v36 }
 0x25d   :  { %2601 = vmatprep.subr.bf16.mxu1 %v2920_v57 }
 0x260   :  { %2602 = vmatpush3.bf16.msra.mxu1 %v2921_v8 }
 0x261   :  { %2603 = vmatprep.subr.bf16.mxu1 %v2922_v42 }
 0x264   :  { %2604 = vmatpush3.bf16.msra.mxu1 %v2923_v11 }
 0x265   :  { %2605 = vmatprep.subr.bf16.mxu1 %v2924_v30 }
 0x268   :  { %2606 = vmatpush3.bf16.msra.mxu1 %v2925_v54 }
 0x31e   :  { %v2709_v2 = vpop.f32.mrb[84].mxu1 }
 0x31f   :  { %v2175_v33 = vadd.f32 %v2709_v2, %v1952_v41  ;;  %v2166_v44 = vpop.f32.mrb[85].mxu1 }
 0x320   :  { %v2167_v52 = vadd.f32 %v2166_v44, %v1952_v41  ;;  %v2710_v35 = vpop.f32.mrb[86].mxu1 }
 0x321   :  { %2992 = vtanh.f32 %v2175_v33  ;;  %v2178_v16 = vadd.f32 %v2710_v35, %v1952_v41  ;;  %v2169_v28 = vpop.f32.mrb[87].mxu1 }
 0x322   :  { %2994 = vtanh.f32 %v2167_v52  ;;  %v2170_v32 = vadd.f32 %v2169_v28, %v1952_v41 }
 0x323   :  { %2996 = vtanh.f32 %v2178_v16 }
 0x324   :  { %2998 = vtanh.f32 %v2170_v32 }
 0x32b   :  { %v2993_v19 = vpop.eup %2992 }
 0x32c   :  { %v2995_v7 = vpop.eup %2994 }
 0x32d   :  { %v2997_v47 = vpop.eup %2996 }
 0x32e   :  { %v2999_v58 = vpop.eup %2998  ;;  %v2186_v3 = vpack.c.bf16 %v2997_v47, %v2993_v19 }
 0x32f   :  { %v2185_v43 = vpack.c.bf16 %v2999_v58, %v2995_v7 }
 0x331   :  { %2332 = vmatprep.mubr.bf16.mxu1 %v2185_v43 }
 0x332   :  { %2333 = vmatmul.mubr.bf16.vlgmr.msra.gmra.mrb[88].mxu1 %v2926_v49 }
 0x333   :  { %2340 = vmatprep.mubr.bf16.mxu1 %v2186_v3 }
 0x33a   :  { %2341 = vmatmul.mubr.bf16.gmra.mrb[92].mxu1 %v2927_v51 }
 0x405   :  { %v2607_v60 = vpop.f32.mrb[88].mxu1 }
 0x406   :  { %v2608_v55 = vpop.f32.mrb[89].mxu1 }
 0x407   :  { %v2609_v46 = vadd.f32 %v2608_v55, %v2607_v60  ;;  %v2610_v10 = vpop.f32.mrb[90].mxu1 }
 0x408   :  { %v2611_v53 = vpop.f32.mrb[91].mxu1 }
 0x409   :  { %v2335_v50 = vadd.f32 %v2609_v46, %v2203_v18  ;;  %v2612_v39 = vadd.f32 %v2611_v53, %v2610_v10 }
 0x40b   :  { %2349 = vst [vmem:[#allocation8] sm:$0xff] %v2335_v50  ;;  %v2338_v56 = vadd.f32 %v2612_v39, %v2203_v18 }
 0x40d   :  { %2350 = vst [vmem:[#allocation8 + $0x8] sm:$0xff] %v2338_v56  ;;  %v2613_v23 = vpop.f32.mrb[92].mxu1 }
 0x40e   :  { %v2614_v29 = vpop.f32.mrb[93].mxu1 }
 0x40f   :  { %v2615_v63 = vadd.f32 %v2614_v29, %v2613_v23  ;;  %v2616_v4 = vpop.f32.mrb[94].mxu1 }
 0x410   :  { %v2617_v0 = vpop.f32.mrb[95].mxu1 }
 0x411   :  { %v2343_v1 = vadd.f32 %v2615_v63, %v2203_v18  ;;  %v2618_v9 = vadd.f32 %v2617_v0, %v2616_v4 }
 0x413   :  { %2351 = vst [vmem:[#allocation8 + $0x10] sm:$0xff] %v2343_v1  ;;  %v2346_v21 = vadd.f32 %v2618_v9, %v2203_v18 }
 0x415   :  { %2352 = vst [vmem:[#allocation8 + $0x18] sm:$0xff] %v2346_v21 }
 0x416   :  { %3077 = shalt.err (!%p3074_p0)
}
 0x417   :  { %s3078_s27 = scalar_lea.hbm %s3533_s3, 512 }
 0x418   :  { %p3079_p1 = scmp.ne.s32.totalorder %s3533_s3, %s3078_s27  ;;  %p3082_p2 = scmp.lt.u32.totalorder %s3078_s27, %s3533_s3 }
 0x41a   :  { %p3084_p3 = pnand %p3082_p2, %p3079_p1 }
 0x41c   :  { %3087 = shalt.err (!%p3084_p3)
}
 0x41d   :  { %s3103_s5 = smov 128   ;;  %s3104_s6 = smov 8  }
 0x41e   :  { %2364 = dma.vmem_to_hbm [thread:$0]  %s2359_s22, 512, %s3533_s3, [#allocation4], %s3103_s5, %s3103_s5, %s3104_s6  }
 0x41f   :  { %3092 = dma.done.wait [#allocation4], 512  }
 0x420   :  { %3093 = vsyncadd [#allocation4], 4294966784 }
 0x421   :  { %2368 = vsyncpa [#allocation3], 1 }
 0x422   :  { %2369 = vsyncpa [#allocation6], 1 }
 0x423   :  { %2370 = vsyncpa [#allocation4], 1 }

</bundles_post_ra>
